<compile_context>
chip_gen: v7x
topology: tpu7x:2x2x1
jax: 0.10.0
libtpu: 0.0.40
codegen_flags: <defaults>
</compile_context>

<pallas_src>
import functools

import jax
import jax.numpy as jnp
from jax import lax
from jax.experimental import pallas as pl
from jax.experimental.pallas import tpu as pltpu


def _round_up(x, m):
    return (x + m - 1) // m * m


def _flash_self_attn_kernel(xq_ref, xkv_ref, w_ref, b_ref, gamma_ref, o_ref,
                            q_scr, m_scr, l_scr, acc_scr,
                            *, n_keys, blk, c8p):
    ki = pl.program_id(2)
    nk = pl.num_programs(2)

    @pl.when(ki == 0)
    def _init():
        # q projection for this query tile; cached (bf16) across all kv steps
        xq = xq_ref[0].astype(jnp.bfloat16)
        q = (jnp.dot(xq, w_ref[:, :c8p],
                     preferred_element_type=jnp.float32)
             + b_ref[:, :c8p])
        q_scr[...] = q.astype(jnp.bfloat16)
        m_scr[...] = jnp.full_like(m_scr, -jnp.inf)
        l_scr[...] = jnp.zeros_like(l_scr)
        acc_scr[...] = jnp.zeros_like(acc_scr)

    # fused k|v projection of the current kv tile (one MXU pass)
    xkv = xkv_ref[0].astype(jnp.bfloat16)
    kv = (jnp.dot(xkv, w_ref[:, c8p:], preferred_element_type=jnp.float32)
          + b_ref[:, c8p:])                          # (blk, C8p + Cp)
    k = kv[:, :c8p].astype(jnp.bfloat16)             # (blk, C8p)
    v = kv[:, c8p:].astype(jnp.bfloat16)             # (blk, Cp)

    # energy: contract the shared C8 axis directly (no explicit transpose)
    s = lax.dot_general(q_scr[...], k,
                        (((1,), (1,)), ((), ())),
                        preferred_element_type=jnp.float32)       # (blk, blk)

    if n_keys % blk != 0:
        # padded key rows carry the projection bias -> mask them out
        key_idx = ki * blk + lax.broadcasted_iota(jnp.int32, (1, blk), 1)
        s = jnp.where(key_idx < n_keys, s, -jnp.inf)

    # online softmax; normalization deferred to the last kv step
    m_prev = m_scr[...]
    m_new = jnp.maximum(m_prev, jnp.max(s, axis=-1, keepdims=True))
    alpha = jnp.exp(m_prev - m_new)
    p = jnp.exp(s - m_new)                                        # (blk, blk)
    l_scr[...] = alpha * l_scr[...] + jnp.sum(p, axis=-1, keepdims=True)
    acc_scr[...] = alpha * acc_scr[...] + jnp.dot(
        p.astype(jnp.bfloat16), v, preferred_element_type=jnp.float32)
    m_scr[...] = m_new

    @pl.when(ki == nk - 1)
    def _finalize():
        inv_l = pl.reciprocal(l_scr[...], approx=True)
        out = acc_scr[...] * inv_l
        x_res = xq_ref[0].astype(jnp.float32)
        o_ref[0] = (gamma_ref[0, 0] * out + x_res).astype(o_ref.dtype)


def self_attention_init(x_nchw, params, *, block=256):
    """x_nchw: (B, C, W, H) float32. Returns (B, C, W, H)."""
    B, C, W, H = x_nchw.shape
    N = W * H
    C8 = params["wq"].shape[1]

    Cp = _round_up(C, 128)        # lane-dense channel dim
    C8p = _round_up(C8, 128)      # lane-dense (and tile-aligned) q/k width
    Dp = 2 * C8p + Cp             # packed q | k | v output width

    blk = min(block, _round_up(N, 8))
    Np = _round_up(N, blk)
    nt = Np // blk

    # NCHW -> pixel-major (B, N, C), zero-padded to lane-dense (B, Np, Cp)
    x_nc = x_nchw.reshape(B, C, N).transpose(0, 2, 1)
    x_p = jnp.pad(x_nc, ((0, 0), (0, Np - N), (0, Cp - C)))

    # pack q|k|v weights into one bf16 matrix (zero-padded segments); biases f32
    w_qkv = jnp.zeros((Cp, Dp), jnp.float32)
    w_qkv = w_qkv.at[:C, 0:C8].set(params["wq"])
    w_qkv = w_qkv.at[:C, C8p:C8p + C8].set(params["wk"])
    w_qkv = w_qkv.at[:C, 2 * C8p:2 * C8p + C].set(params["wv"])
    w_qkv = w_qkv.astype(jnp.bfloat16)
    b_qkv = jnp.zeros((1, Dp), jnp.float32)
    b_qkv = b_qkv.at[:, 0:C8].set(params["bq"])
    b_qkv = b_qkv.at[:, C8p:C8p + C8].set(params["bk"])
    b_qkv = b_qkv.at[:, 2 * C8p:2 * C8p + C].set(params["bv"])

    gamma = params["gamma"].reshape(1, 1).astype(jnp.float32)

    kernel = functools.partial(_flash_self_attn_kernel,
                               n_keys=N, blk=blk, c8p=C8p)

    out_p = pl.pallas_call(
        kernel,
        out_shape=jax.ShapeDtypeStruct((B, Np, Cp), x_nchw.dtype),
        grid=(B, nt, nt),
        in_specs=[
            pl.BlockSpec((1, blk, Cp), lambda b, qi, ki: (b, qi, 0)),  # x (q rows / residual)
            pl.BlockSpec((1, blk, Cp), lambda b, qi, ki: (b, ki, 0)),  # x (kv rows)
            pl.BlockSpec((Cp, Dp), lambda b, qi, ki: (0, 0)),          # packed W_qkv (bf16)
            pl.BlockSpec((1, Dp), lambda b, qi, ki: (0, 0)),           # packed bias (f32)
            pl.BlockSpec(memory_space=pltpu.MemorySpace.SMEM),         # gamma (1, 1)
        ],
        out_specs=pl.BlockSpec((1, blk, Cp), lambda b, qi, ki: (b, qi, 0)),
        scratch_shapes=[
            pltpu.VMEM((blk, C8p), jnp.bfloat16),  # cached q tile (bf16)
            pltpu.VMEM((blk, 1), jnp.float32),     # running max
            pltpu.VMEM((blk, 1), jnp.float32),     # running (unnormalized) sum
            pltpu.VMEM((blk, Cp), jnp.float32),    # output accumulator
        ],
        compiler_params=pltpu.CompilerParams(
            dimension_semantics=("parallel", "parallel", "arbitrary"),
            vmem_limit_bytes=32 * 1024 * 1024),
    )(x_p, x_p, w_qkv, b_qkv, gamma)   # x passed twice: q/residual stream + kv stream

    # un-pad and back to NCHW
    out = out_p[:, :N, :C]
    return out.transpose(0, 2, 1).reshape(B, C, W, H)


def reference(x_nchw, p):
    """Pure-JAX f32 reference mirroring the PyTorch forward."""
    B, C, W, H = x_nchw.shape
    N = W * H
    x = x_nchw.reshape(B, C, N).transpose(0, 2, 1)            # (B, N, C)
    q = x @ p["wq"] + p["bq"]                                  # (B, N, C8)
    k = x @ p["wk"] + p["bk"]                                  # (B, N, C8)
    v = x @ p["wv"] + p["bv"]                                  # (B, N, C)
    e = jnp.einsum("bic,bjc->bij", q, k)                       # (B, N, N)
    a = jax.nn.softmax(e, axis=-1)
    out = jnp.einsum("bij,bjc->bic", a, v)                     # (B, N, C)
    out = p["gamma"][0, 0] * out + x
    return out.transpose(0, 2, 1).reshape(B, C, W, H)


def make_params(key, C):
    """Deterministic parameter init (shapes from SelfAttentionInit.__init__).

    PyTorch Conv2d 1x1 weights are (C_out, C_in, 1, 1); stored pre-transposed
    as (C_in, C_out) so the kernel does x @ W directly. gamma is zero-init
    exactly as in the module.
    """
    C8 = C // 8
    k1, k2, k3, k4, k5, k6 = jax.random.split(key, 6)
    scale = 0.1
    return {
        "wq": scale * jax.random.normal(k1, (C, C8), jnp.float32),
        "wk": scale * jax.random.normal(k2, (C, C8), jnp.float32),
        "wv": scale * jax.random.normal(k3, (C, C), jnp.float32),
        "bq": scale * jax.random.normal(k4, (1, C8), jnp.float32),
        "bk": scale * jax.random.normal(k5, (1, C8), jnp.float32),
        "bv": scale * jax.random.normal(k6, (1, C), jnp.float32),
        "gamma": jnp.zeros((1, 1), jnp.float32),   # nn.Parameter(torch.zeros(1))
    }


if __name__ == "__main__":
    key = jax.random.PRNGKey(0)
    kx, kp, kx2 = jax.random.split(key, 3)

    # Case 1: B=2, C=16 (C8=2), 16x16 spatial -> N=256; block=128 exercises
    # 2 query tiles x 2 kv tiles per batch element (full online-softmax path).
    B, C, W, H = 2, 16, 16, 16
    x = jax.random.normal(kx, (B, C, W, H), jnp.float32)
    params = make_params(kp, C)

    # Faithful init (gamma = 0 -> out == x per module semantics)
    out = jax.block_until_ready(self_attention_init(x, params, block=128))
    ref = reference(x, params)
    assert out.shape == (B, C, W, H)
    assert jnp.allclose(out, ref, atol=1e-5, rtol=1e-5)

    # Non-zero gamma exercises the attention path (bf16 MXU -> looser tolerance)
    params_g = dict(params, gamma=jnp.full((1, 1), 0.5, jnp.float32))
    out_g = jax.block_until_ready(self_attention_init(x, params_g, block=128))
    ref_g = reference(x, params_g)
    assert jnp.allclose(out_g, ref_g, atol=1e-2, rtol=1e-2)

    # Case 2: spatial size not a multiple of the block -> exercises key masking
    x2 = jax.random.normal(kx2, (B, C, 5, 5), jnp.float32)   # N = 25 -> padded to 32
    out2 = jax.block_until_ready(self_attention_init(x2, params_g, block=128))
    ref2 = reference(x2, params_g)
    assert jnp.allclose(out2, ref2, atol=1e-2, rtol=1e-2)

    print("KERNEL_OK")
</pallas_src>

<mosaic_0001>
module attributes {stable_mosaic.version = 11 : i64} {
  func.func @_flash_self_attn_kernel(%arg0: i32, %arg1: i32, %arg2: i32, %arg3: memref<1x128x128xf32, #tpu.memory_space<vmem>>, %arg4: memref<1x128x128xf32, #tpu.memory_space<vmem>>, %arg5: memref<128x384xbf16, #tpu.memory_space<vmem>>, %arg6: memref<1x384xf32, #tpu.memory_space<vmem>>, %arg7: memref<1x1xf32, #tpu.memory_space<smem>>, %arg8: memref<1x128x128xf32, #tpu.memory_space<vmem>>, %arg9: memref<128x128xbf16, #tpu.memory_space<vmem>>, %arg10: memref<128x1xf32, #tpu.memory_space<vmem>>, %arg11: memref<128x1xf32, #tpu.memory_space<vmem>>, %arg12: memref<128x128xf32, #tpu.memory_space<vmem>>) attributes {dimension_semantics = [#tpu.dimension_semantics<parallel>, #tpu.dimension_semantics<parallel>, #tpu.dimension_semantics<arbitrary>], iteration_bounds = array<i64: 2, 2, 2>, scalar_prefetch = 0 : i64, scratch_operands = 4 : i64, tpu.core_type = #tpu.core_type<tc>, window_params = [{transform_indices = @transform_0, window_bounds = array<i64: 1, 128, 128>}, {transform_indices = @transform_1, window_bounds = array<i64: 1, 128, 128>}, {pipeline_mode = #tpu.pipeline_mode<synchronous>, transform_indices = @transform_2, window_bounds = array<i64: 128, 384>}, {pipeline_mode = #tpu.pipeline_mode<synchronous>, transform_indices = @transform_3, window_bounds = array<i64: 1, 384>}, {transform_indices = @transform_4, window_bounds = array<i64: 1, 1>}, {transform_indices = @transform_5, window_bounds = array<i64: 1, 128, 128>}]} {
    %c0_i32 = arith.constant 0 : i32
    %0 = arith.cmpi eq, %arg2, %c0_i32 : i32
    %1 = arith.extui %0 : i1 to i32
    %c0_i32_0 = arith.constant 0 : i32
    %2 = arith.cmpi ne, %1, %c0_i32_0 : i32
    scf.if %2 {
      %c0_25 = arith.constant 0 : index
      %c0_26 = arith.constant 0 : index
      %c0_27 = arith.constant 0 : index
      %43 = vector.load %arg3[%c0_25, %c0_26, %c0_27] : memref<1x128x128xf32, #tpu.memory_space<vmem>>, vector<1x128x128xf32>
      %44 = vector.shape_cast %43 : vector<1x128x128xf32> to vector<128x128xf32>
      %45 = arith.truncf %44 : vector<128x128xf32> to vector<128x128xbf16>
      %c0_28 = arith.constant 0 : index
      %c0_29 = arith.constant 0 : index
      %46 = vector.load %arg5[%c0_28, %c0_29] : memref<128x384xbf16, #tpu.memory_space<vmem>>, vector<128x128xbf16>
      %cst_30 = arith.constant dense<0.000000e+00> : vector<128x128xf32>
      %47 = tpu.matmul %45, %46, %cst_30 {dimension_numbers = #tpu.dot_dimension_numbers<[1], [0], [0], [1], [0, 0, 1, 1], [], []>} : vector<128x128xbf16>, vector<128x128xbf16>, vector<128x128xf32> -> vector<128x128xf32>
      %c0_31 = arith.constant 0 : index
      %c0_32 = arith.constant 0 : index
      %48 = vector.load %arg6[%c0_31, %c0_32] : memref<1x384xf32, #tpu.memory_space<vmem>>, vector<1x128xf32>
      %49 = vector.broadcast %48 : vector<1x128xf32> to vector<128x128xf32>
      %50 = arith.addf %47, %49 : vector<128x128xf32>
      %51 = arith.truncf %50 : vector<128x128xf32> to vector<128x128xbf16>
      %c0_33 = arith.constant 0 : index
      %c0_34 = arith.constant 0 : index
      %52 = vector.load %arg9[%c0_33, %c0_34] : memref<128x128xbf16, #tpu.memory_space<vmem>>, vector<128x128xbf16>
      tpu.vector_store %arg9[%c0_33, %c0_34], %51 {strides = array<i32>} : memref<128x128xbf16, #tpu.memory_space<vmem>>, vector<128x128xbf16>,
      %cst_35 = arith.constant 0xFF800000 : f32
      %53 = vector.broadcast %cst_35 : f32 to vector<128x1xf32>
      %c0_36 = arith.constant 0 : index
      %c0_37 = arith.constant 0 : index
      %54 = vector.load %arg10[%c0_36, %c0_37] : memref<128x1xf32, #tpu.memory_space<vmem>>, vector<128x1xf32>
      tpu.vector_store %arg10[%c0_36, %c0_37], %53 {strides = array<i32>} : memref<128x1xf32, #tpu.memory_space<vmem>>, vector<128x1xf32>,
      %cst_38 = arith.constant 0.000000e+00 : f32
      %55 = vector.broadcast %cst_38 : f32 to vector<128x1xf32>
      %c0_39 = arith.constant 0 : index
      %c0_40 = arith.constant 0 : index
      %56 = vector.load %arg11[%c0_39, %c0_40] : memref<128x1xf32, #tpu.memory_space<vmem>>, vector<128x1xf32>
      tpu.vector_store %arg11[%c0_39, %c0_40], %55 {strides = array<i32>} : memref<128x1xf32, #tpu.memory_space<vmem>>, vector<128x1xf32>,
      %cst_41 = arith.constant 0.000000e+00 : f32
      %57 = vector.broadcast %cst_41 : f32 to vector<128x128xf32>
      %c0_42 = arith.constant 0 : index
      %c0_43 = arith.constant 0 : index
      %58 = vector.load %arg12[%c0_42, %c0_43] : memref<128x128xf32, #tpu.memory_space<vmem>>, vector<128x128xf32>
      tpu.vector_store %arg12[%c0_42, %c0_43], %57 {strides = array<i32>} : memref<128x128xf32, #tpu.memory_space<vmem>>, vector<128x128xf32>,
    } else {
    }
    %c0 = arith.constant 0 : index
    %c0_1 = arith.constant 0 : index
    %c0_2 = arith.constant 0 : index
    %3 = vector.load %arg4[%c0, %c0_1, %c0_2] : memref<1x128x128xf32, #tpu.memory_space<vmem>>, vector<1x128x128xf32>
    %4 = vector.shape_cast %3 : vector<1x128x128xf32> to vector<128x128xf32>
    %5 = arith.truncf %4 : vector<128x128xf32> to vector<128x128xbf16>
    %c0_3 = arith.constant 0 : index
    %c128 = arith.constant 128 : index
    %6 = vector.load %arg5[%c0_3, %c128] : memref<128x384xbf16, #tpu.memory_space<vmem>>, vector<128x256xbf16>
    %cst = arith.constant dense<0.000000e+00> : vector<128x256xf32>
    %7 = tpu.matmul %5, %6, %cst {dimension_numbers = #tpu.dot_dimension_numbers<[1], [0], [0], [1], [0, 0, 1, 1], [], []>} : vector<128x128xbf16>, vector<128x256xbf16>, vector<128x256xf32> -> vector<128x256xf32>
    %c0_4 = arith.constant 0 : index
    %c128_5 = arith.constant 128 : index
    %8 = vector.load %arg6[%c0_4, %c128_5] : memref<1x384xf32, #tpu.memory_space<vmem>>, vector<1x256xf32>
    %9 = vector.broadcast %8 : vector<1x256xf32> to vector<128x256xf32>
    %10 = arith.addf %7, %9 : vector<128x256xf32>
    %11 = vector.extract_strided_slice %10 {offsets = [0, 0], sizes = [128, 128], strides = [1, 1]} : vector<128x256xf32> to vector<128x128xf32>
    %12 = arith.truncf %11 : vector<128x128xf32> to vector<128x128xbf16>
    %13 = vector.extract_strided_slice %10 {offsets = [0, 128], sizes = [128, 128], strides = [1, 1]} : vector<128x256xf32> to vector<128x128xf32>
    %14 = arith.truncf %13 : vector<128x128xf32> to vector<128x128xbf16>
    %c0_6 = arith.constant 0 : index
    %c0_7 = arith.constant 0 : index
    %15 = vector.load %arg9[%c0_6, %c0_7] : memref<128x128xbf16, #tpu.memory_space<vmem>>, vector<128x128xbf16>
    %cst_8 = arith.constant dense<0.000000e+00> : vector<128x128xf32>
    %16 = tpu.matmul %15, %12, %cst_8 {dimension_numbers = #tpu.dot_dimension_numbers<[1], [1], [0], [0], [0, 0, 1, 0], [], []>} : vector<128x128xbf16>, vector<128x128xbf16>, vector<128x128xf32> -> vector<128x128xf32>
    %c0_9 = arith.constant 0 : index
    %c0_10 = arith.constant 0 : index
    %17 = vector.load %arg10[%c0_9, %c0_10] : memref<128x1xf32, #tpu.memory_space<vmem>>, vector<128x1xf32>
    %cst_11 = arith.constant dense<0xFF800000> : vector<128xf32>
    %18 = vector.multi_reduction <maximumf>, %16, %cst_11 [1] : vector<128x128xf32> to vector<128xf32>
    %19 = vector.shape_cast %18 : vector<128xf32> to vector<128x1xf32>
    %20 = arith.maximumf %17, %19 : vector<128x1xf32>
    %21 = arith.subf %17, %20 : vector<128x1xf32>
    %22 = math.exp %21 : vector<128x1xf32>
    %23 = vector.broadcast %20 : vector<128x1xf32> to vector<128x128xf32>
    %24 = arith.subf %16, %23 : vector<128x128xf32>
    %25 = math.exp %24 : vector<128x128xf32>
    %c0_12 = arith.constant 0 : index
    %c0_13 = arith.constant 0 : index
    %26 = vector.load %arg11[%c0_12, %c0_13] : memref<128x1xf32, #tpu.memory_space<vmem>>, vector<128x1xf32>
    %27 = arith.mulf %22, %26 : vector<128x1xf32>
    %cst_14 = arith.constant dense<0.000000e+00> : vector<128xf32>
    %28 = vector.multi_reduction <add>, %25, %cst_14 [1] : vector<128x128xf32> to vector<128xf32>
    %29 = vector.shape_cast %28 : vector<128xf32> to vector<128x1xf32>
    %30 = arith.addf %27, %29 : vector<128x1xf32>
    %c0_15 = arith.constant 0 : index
    %c0_16 = arith.constant 0 : index
    %31 = vector.load %arg11[%c0_15, %c0_16] : memref<128x1xf32, #tpu.memory_space<vmem>>, vector<128x1xf32>
    tpu.vector_store %arg11[%c0_15, %c0_16], %30 {strides = array<i32>} : memref<128x1xf32, #tpu.memory_space<vmem>>, vector<128x1xf32>,
    %c0_17 = arith.constant 0 : index
    %c0_18 = arith.constant 0 : index
    %32 = vector.load %arg12[%c0_17, %c0_18] : memref<128x128xf32, #tpu.memory_space<vmem>>, vector<128x128xf32>
    %33 = vector.broadcast %22 : vector<128x1xf32> to vector<128x128xf32>
    %34 = arith.mulf %33, %32 : vector<128x128xf32>
    %35 = arith.truncf %25 : vector<128x128xf32> to vector<128x128xbf16>
    %cst_19 = arith.constant dense<0.000000e+00> : vector<128x128xf32>
    %36 = tpu.matmul %35, %14, %cst_19 {dimension_numbers = #tpu.dot_dimension_numbers<[1], [0], [0], [1], [0, 0, 1, 1], [], []>} : vector<128x128xbf16>, vector<128x128xbf16>, vector<128x128xf32> -> vector<128x128xf32>
    %37 = arith.addf %34, %36 : vector<128x128xf32>
    %c0_20 = arith.constant 0 : index
    %c0_21 = arith.constant 0 : index
    %38 = vector.load %arg12[%c0_20, %c0_21] : memref<128x128xf32, #tpu.memory_space<vmem>>, vector<128x128xf32>
    tpu.vector_store %arg12[%c0_20, %c0_21], %37 {strides = array<i32>} : memref<128x128xf32, #tpu.memory_space<vmem>>, vector<128x128xf32>,
    %c0_22 = arith.constant 0 : index
    %c0_23 = arith.constant 0 : index
    %39 = vector.load %arg10[%c0_22, %c0_23] : memref<128x1xf32, #tpu.memory_space<vmem>>, vector<128x1xf32>
    tpu.vector_store %arg10[%c0_22, %c0_23], %20 {strides = array<i32>} : memref<128x1xf32, #tpu.memory_space<vmem>>, vector<128x1xf32>,
    %c1_i32 = arith.constant 1 : i32
    %40 = arith.cmpi eq, %arg2, %c1_i32 : i32
    %41 = arith.extui %40 : i1 to i32
    %c0_i32_24 = arith.constant 0 : i32
    %42 = arith.cmpi ne, %41, %c0_i32_24 : i32
    scf.if %42 {
      %c0_25 = arith.constant 0 : index
      %c0_26 = arith.constant 0 : index
      %43 = vector.load %arg11[%c0_25, %c0_26] : memref<128x1xf32, #tpu.memory_space<vmem>>, vector<128x1xf32>
      %44 = tpu.reciprocal %43 {approx = true} : vector<128x1xf32> -> vector<128x1xf32>
      %c0_27 = arith.constant 0 : index
      %c0_28 = arith.constant 0 : index
      %45 = vector.load %arg12[%c0_27, %c0_28] : memref<128x128xf32, #tpu.memory_space<vmem>>, vector<128x128xf32>
      %46 = vector.broadcast %44 : vector<128x1xf32> to vector<128x128xf32>
      %47 = arith.mulf %45, %46 : vector<128x128xf32>
      %c0_29 = arith.constant 0 : index
      %c0_30 = arith.constant 0 : index
      %c0_31 = arith.constant 0 : index
      %48 = vector.load %arg3[%c0_29, %c0_30, %c0_31] : memref<1x128x128xf32, #tpu.memory_space<vmem>>, vector<1x128x128xf32>
      %49 = vector.shape_cast %48 : vector<1x128x128xf32> to vector<128x128xf32>
      %c0_32 = arith.constant 0 : index
      %c0_33 = arith.constant 0 : index
      %50 = memref.load %arg7[%c0_32, %c0_33] : memref<1x1xf32, #tpu.memory_space<smem>>
      %51 = vector.broadcast %50 : f32 to vector<128x128xf32>
      %52 = arith.mulf %51, %47 : vector<128x128xf32>
      %53 = arith.addf %52, %49 : vector<128x128xf32>
      %c0_34 = arith.constant 0 : index
      %c0_35 = arith.constant 0 : index
      %c0_36 = arith.constant 0 : index
      %54 = vector.load %arg8[%c0_34, %c0_35, %c0_36] : memref<1x128x128xf32, #tpu.memory_space<vmem>>, vector<1x128x128xf32>
      %55 = vector.shape_cast %54 : vector<1x128x128xf32> to vector<128x128xf32>
      %56 = vector.shape_cast %53 : vector<128x128xf32> to vector<1x128x128xf32>
      tpu.vector_store %arg8[%c0_34, %c0_35, %c0_36], %56 {strides = array<i32>} : memref<1x128x128xf32, #tpu.memory_space<vmem>>, vector<1x128x128xf32>,
    } else {
    }
    return
  }
  func.func @transform_0(%arg0: i32, %arg1: i32, %arg2: i32) -> (i32, i32, i32) {
    %c0_i32 = arith.constant 0 : i32
    %c0_i32_0 = arith.constant 0 : i32
    return %arg0, %arg1, %c0_i32 : i32, i32, i32
  }
  func.func @transform_1(%arg0: i32, %arg1: i32, %arg2: i32) -> (i32, i32, i32) {
    %c0_i32 = arith.constant 0 : i32
    %c0_i32_0 = arith.constant 0 : i32
    return %arg0, %arg2, %c0_i32 : i32, i32, i32
  }
  func.func @transform_2(%arg0: i32, %arg1: i32, %arg2: i32) -> (i32, i32) {
    %c0_i32 = arith.constant 0 : i32
    %c0_i32_0 = arith.constant 0 : i32
    %c0_i32_1 = arith.constant 0 : i32
    return %c0_i32, %c0_i32_0 : i32, i32
  }
  func.func @transform_3(%arg0: i32, %arg1: i32, %arg2: i32) -> (i32, i32) {
    %c0_i32 = arith.constant 0 : i32
    %c0_i32_0 = arith.constant 0 : i32
    %c0_i32_1 = arith.constant 0 : i32
    return %c0_i32, %c0_i32_0 : i32, i32
  }
  func.func @transform_4(%arg0: i32, %arg1: i32, %arg2: i32) -> (i32, i32) {
    %c0_i32 = arith.constant 0 : i32
    %c0_i32_0 = arith.constant 0 : i32
    %c0_i32_1 = arith.constant 0 : i32
    return %c0_i32, %c0_i32_0 : i32, i32
  }
  func.func @transform_5(%arg0: i32, %arg1: i32, %arg2: i32) -> (i32, i32, i32) {
    %c0_i32 = arith.constant 0 : i32
    %c0_i32_0 = arith.constant 0 : i32
    return %arg0, %arg1, %c0_i32 : i32, i32, i32
  }
}

</mosaic_0001>

<bundles_post_ra>
// kernel: tpu_custom_call.1
= control target key start
LH: loop header
LB: loop body
LE: loop exit
PB: predicated region body
PF: predicated region fallthrough
CT: control target
= control target key end

     0   :  { %s3596_s0 = inlined_call_operand.hbm [shape: f32[2,256,128], index: 0, kind: input, shape index: {}]   ;;  %s3597_s1 = inlined_call_operand.hbm [shape: f32[2,256,128], index: 1, kind: input, shape index: {}]   ;;  %s3598_s2 = inlined_call_operand.hbm [shape: bf16[128,384], index: 2, kind: input, shape index: {}]   ;;  %s3599_s3 = inlined_call_operand.vmem [shape: f32[1,384], index: 3, kind: input, shape index: {}]   ;;  %s3600_s4 = inlined_call_operand.<no memory space> [shape: f32[1,1], index: 4, kind: input, shape index: {}]   ;;  %s3601_s5 = inlined_call_operand.hbm [shape: f32[2,256,128], index: 5, kind: output, shape index: {}]  }
   0x1   :  { %3620 = sst [smem:[#allocation29_spill]] %s3598_s2 }
   0x2   :  { %3621 = sst [smem:[#allocation30_spill]] %s3599_s3 }
   0x3   :  { %3622 = sst [smem:[#allocation31_spill]] %s3601_s5 }
   0x4   :  { %10 = sst [smem:[#allocation6]] %s3600_s4 }
   0x5   :  { %11 = vsyncpa [#allocation8], 0 }
   0x6   :  { %13 = vsyncpa [#allocation8 + $0x1], 0 }
   0x7   :  { %14 = vsyncpa [#allocation11], 0 }
   0x8   :  { %16 = vsyncpa [#allocation11 + $0x1], 0 }
   0x9   :  { %17 = vsyncpa [#allocation9], 0 }
   0xa   :  { %19 = vsyncpa [#allocation9 + $0x1], 0  ;;  %s2707_s20 = smov 0   ;;  %s2709_s21 = smov 0  }
   0xb   :  { %s2711_s22 = smov 0   ;;  %s2713_s23 = smov 0  }
   0xc   :  { %s2715_s24 = smov 0   ;;  %s2717_s25 = smov 0  }
   0xd   :  { %s2719_s26 = smov 0   ;;  %s2721_s4 = smov 0  }
   0xe   :  { %s2723_s27 = smov 0   ;;  %s2725_s28 = smov 0  }
   0xf   :  { %s2727_s29 = smov 0   ;;  %s2729_s30 = smov 0  }
  0x10   :  { %s2731_s6 = smov 0  }
  0x11 LB: > { %3623 = sst [smem:[#allocation18_spill]] %s2622_s23  ;;  %s2771_s7 = sadd.s32 4294967295, %s2658_s6   ;;  %s2658_s6 = sphi %s2731_s6, %s25_s6   ;;  %s2654_s30 = sphi %s2729_s30, %s3683_s30   ;;  %s2650_s29 = sphi %s2727_s29, %s3682_s29   ;;  %s2646_s28 = sphi %s2725_s28, %s3681_s28   ;;  %s2642_s27 = sphi %s2723_s27, %s3680_s27   ;;  %s2638_s4 = sphi %s2721_s4, %s3679_s4   ;;  %s2634_s26 = sphi %s2719_s26, %s3678_s26   ;;  %s2630_s25 = sphi %s2717_s25, %s3677_s25   ;;  %s2626_s24 = sphi %s2715_s24, %s3676_s24   ;;  %s2622_s23 = sphi %s2713_s23, %s3675_s23   ;;  %s2618_s22 = sphi %s2711_s22, %s3674_s22   ;;  %s2614_s21 = sphi %s2709_s21, %s3673_s21   ;;  %s2610_s20 = sphi %s2707_s20, %s3672_s20  }
  0x12   : > { %3624 = sst [smem:[#allocation19_spill]] %s2634_s26  ;;  %s1922_s8 = sadd.s32 4294967294, %s2658_s6  }
  0x13   : > { %3625 = sst [smem:[#allocation20_spill]] %s2638_s4  ;;  %p66_p0 = scmp.ne.s32.totalorder %s2626_s24, %s2622_s23 }
  0x14   : > { %3626 = sst [smem:[#allocation21_spill]] %s2642_s27  ;;  %p3603_p1 = scmp.eq.s32.totalorder %s2771_s7, 0 }
  0x15   : > { %3627 = sst [smem:[#allocation22_spill]] %s2771_s7  ;;  %p94_p2 = scmp.ne.s32.totalorder %s2614_s21, %s2610_s20 }
  0x16   : > { %p2781_p4 = por %p3603_p1, %p66_p0  ;;  %p189_p5 = scmp.eq.s32.totalorder %s1922_s8, 7 }
  0x17   : > { %p2787_p6 = por %p94_p2, %p3603_p1  ;;  %p1923_p7 = scmp.ge.s32.totalorder %s2658_s6, 1 }
  0x18   : > { %s3628_s9 = scalar_select %p2781_p4, 1, 0 }
  0x19   : > { %s3629_s10 = scalar_select %p2787_p6, 1, 0 }
  0x1a   : > { %p2792_p8 = por %p189_p5, %p66_p0  ;;  %p196_p9 = scmp.lt.s32.totalorder %s2658_s6, 9 }
  0x1b   : > { %3630 = sst [smem:[#allocation23_spill]] %s3629_s10  ;;  %s2660_s13 = smov [#allocation12]  }
  0x1c   : > { %s3631_s11 = scalar_select %p2792_p8, 1, 0 }
  0x1d   : > { %p2797_p10 = pnand %p1923_p7, %p196_p9  ;;  %s208_s14 = sshll.u32 %s2660_s13, 4  ;;  %s209_s14 = int_to_ptr.vmem [resolvable:$true] %s208_s14 }
  0x1e   : > { %3632 = sst [smem:[#allocation24_spill]] %s3631_s11  ;;  %s3635_s2 = sld [smem:[#allocation29_spill]] }
  0x1f   : > { %s3633_s12 = scalar_select %p2797_p10, 1, 0 }
  0x20   : > { %p2158_p11 = pneg %p2797_p10 }
  0x22   : > { %p2805_p12 = pnand %p2158_p11, %p3603_p1 }
  0x24   : > { %s2424_s18 = scalar_lea.hbm %s3635_s2, 3072  ;;  %p2426_p0 = pneg %p2805_p12 }
  0x25   : > { %p2425_p13 = scmp.ne.s32.totalorder %s3635_s2, %s2424_s18  ;;  %p2431_p7 = scmp.lt.u32.totalorder %s2424_s18, %s3635_s2 }
  0x27   : > { %p2427_p2 = pnand %p2426_p0, %p2425_p13 }
  0x29   : > { %p2428_p5 = pneg %p2427_p2 }
  0x2b   : > { %p2433_p9 = pnand %p2431_p7, %p2428_p5 }
  0x2d   : > { %2436 = shalt.err (!%p2433_p9)
}
  0x2e   : > { %s2437_s11 = scalar_lea.vmem %s209_s14, 3072  ;;  %p2445_p8 = scmp.lt.s32.totalorder %s209_s14, %s209_s14 }
  0x2f   : > { %p2438_p11 = scmp.ne.s32.totalorder %s209_s14, %s2437_s11  ;;  %p2446_p6 = scmp.lt.s32.totalorder %s2437_s11, %s2437_s11 }
  0x31   : > { %p2440_p1 = pnand %p2438_p11, %p2426_p0  ;;  %p2447_p4 = por %p2446_p6, %p2445_p8 }
  0x33   : > { %p2441_p3 = pneg %p2440_p1 }
  0x35   : > { %p2448_p10 = pnand %p2447_p4, %p2441_p3 }
  0x37   : > { %2451 = shalt.err (!%p2448_p10)
}
  0x38   : > { %s2661_s16 = smov 192   ;;  %s2662_s17 = smov 12  }
  0x39   : > { %2161 = dma.hbm_to_vmem [thread:$0]  (!%p2805_p12), %s3635_s2, 3072, %s209_s14, [#allocation11], %s2661_s16, %s2661_s16, %s2662_s17  }
  0x3a   : > { %s37_s19 = sadd.s32 1, %s2646_s28  ;;  %s40_s20 = sadd.s32 1, %s2650_s29 }
  0x3b   : > { %p38_p1 = scmp.ge.s32.totalorder %s37_s19, 2  ;;  %s44_s8 = sadd.s32 1, %s2654_s30 }
  0x3c   : > { %s53_s13 = sadd.s32 1, %s2630_s25  ;;  %p60_p3 = scmp.ne.s32.totalorder %s2630_s25, %s2626_s24 }
  0x3d   : > { %s3685_s19 = smov (%p38_p1, %s37_s19), 0  ;;  %s3687_s20 = smov (!%p38_p1, %s40_s20), %s2650_s29 }
  0x3e   : > { %3636 = sst [smem:[#allocation25_spill]] %s3685_s19  ;;  %p3619_p4 = scmp.eq.s32.totalorder %s2658_s6, 0 }
  0x3f   : > { %p42_p6 = scmp.ge.s32.totalorder %s3687_s20, 2  ;;  %s77_s15 = ssub.s32 %s2646_s28, %s3685_s19 }
  0x40   : > { %p2839_p8 = por %p3619_p4, %p60_p3  ;;  %p3638_p10 = scmp.eq.s32.totalorder %s2771_s7, 7 }
  0x41   : > { %s3689_s20 = smov (%p42_p6, %s3687_s20), 0  ;;  %s3691_s8 = smov (!%p42_p6, %s44_s8), %s2654_s30 }
  0x42   : > { %p2845_p12 = por %p3638_p10, %p60_p3  ;;  %3641 = sst [smem:[#allocation27_spill]] %s3689_s20 }
  0x43   : > { %s49_s17 = ssub.s32 %s2650_s29, %s3689_s20  ;;  %p3618_p13 = scmp.lt.s32.totalorder %s2658_s6, 8 }
  0x44   : > { %s3639_s16 = scalar_select %p2845_p12, 1, 0 }
  0x45   : > { %p46_p0 = scmp.ge.s32.totalorder %s3691_s8, 2  ;;  %s228_s18 = sand.u32 1, %s2630_s25  }
  0x46   : > { %3640 = sst [smem:[#allocation26_spill]] %s3639_s16  ;;  %s1926_s11 = sshll.u32 %s228_s18, 7 }
  0x47   : > { %s3693_s8 = smov (%p46_p0, %s3691_s8), 0  ;;  %s1927_s2 = sshll.u32 %s2650_s29, 4 }
  0x48   : > { %3642 = sst [smem:[#allocation28_spill]] %s3693_s8  ;;  %s48_s19 = ssub.s32 %s2654_s30, %s3693_s8 }
  0x49   : > { %s1928_s23 = sshll.u32 %s2654_s30, 5  ;;  %s50_s5 = sor.u32 %s49_s17, %s48_s19 }
  0x4a   : > { %s2862_s16 = sor.u32 %s77_s15, %s48_s19  ;;  %p51_p2 = scmp.eq.s32.totalorder %s50_s5, 0 }
  0x4b   : > { %s238_s20 = sadd.s32 %s1928_s23, %s1927_s2  ;;  %s232_s27 = scalar_lea.vmem [#allocation7], %s1926_s11 }
  0x4c   : > { %s241_s4 = sshll.u32 %s232_s27, 4  ;;  %s1929_s26 = sshll.u32 %s238_s20, 7  ;;  %s2870_s4 = int_to_ptr.vmem [resolvable:$true] %s241_s4 }
  0x4d   : > { %s2868_s3 = scalar_select %p51_p2, %s2630_s25, %s53_s13  }
  0x4e   : > { %s2875_s8 = scalar_lea.hbm %s3596_s0, %s1929_s26  ;;  %p2881_p7 = pnand %p3618_p13, %p2839_p8 }
  0x4f   : > { %s1931_s5 = sshll.u32 %s2646_s28, 4  ;;  %s2886_s27 = scalar_lea.sflag [#allocation8], %s228_s18 }
  0x50   : > { %s2452_s19 = scalar_lea.hbm %s2875_s8, 2048  ;;  %p2454_p11 = pneg %p2881_p7 }
  0x51   : > { %p2453_p9 = scmp.ne.s32.totalorder %s2875_s8, %s2452_s19  ;;  %s2457_s10 = scalar_lea.hbm %s3596_s0, 8192 }
  0x52   : > { %p2458_p6 = scmp.lt.u32.totalorder %s2875_s8, %s3596_s0  ;;  %p2459_p8 = scmp.lt.u32.totalorder %s2457_s10, %s2452_s19 }
  0x53   : > { %p2455_p1 = pnand %p2454_p11, %p2453_p9  ;;  %p2461_p0 = scmp.lt.u32.totalorder %s2452_s19, %s2875_s8 }
  0x54   : > { %p2460_p10 = por %p2459_p8, %p2458_p6 }
  0x55   : > { %p2456_p3 = pneg %p2455_p1 }
  0x56   : > { %p2462_p2 = por %p2461_p0, %p2460_p10 }
  0x58   : > { %p2463_p13 = pnand %p2462_p2, %p2456_p3 }
  0x5a   : > { %2466 = shalt.err (!%p2463_p13)
}
  0x5b   : > { %s2467_s15 = scalar_lea.vmem %s2870_s4, 2048  ;;  %s2663_s14 = smov [#allocation7]  }
  0x5c   : > { %p2468_p9 = scmp.ne.s32.totalorder %s2870_s4, %s2467_s15  ;;  %s2472_s17 = sshll.u32 %s2663_s14, 4  ;;  %s2473_s17 = int_to_ptr.vmem [resolvable:$false] %s2472_s17 }
  0x5d   : > { %s2474_s18 = scalar_lea.vmem %s2473_s17, 4096  ;;  %p2475_p5 = scmp.lt.s32.totalorder %s2870_s4, %s2473_s17 }
  0x5e   : > { %p2470_p1 = pnand %p2468_p9, %p2454_p11  ;;  %p2476_p6 = scmp.lt.s32.totalorder %s2474_s18, %s2467_s15 }
  0x60   : > { %p2471_p4 = pneg %p2470_p1  ;;  %p2477_p8 = por %p2476_p6, %p2475_p5 }
  0x62   : > { %p2478_p10 = pnand %p2477_p8, %p2471_p4 }
  0x64   : > { %2481 = shalt.err (!%p2478_p10)
}
  0x65   : > { %s2664_s11 = smov 128   ;;  %s2665_s19 = smov 8  }
  0x66   : > { %2165 = dma.hbm_to_vmem [thread:$0]  (!%p2881_p7), %s2875_s8, 2048, %s2870_s4, %s2886_s27, %s2664_s11, %s2664_s11, %s2665_s19  }
  0x67   : > { %s261_s26 = sadd.s32 %s1931_s5, %s1928_s23  ;;  %s81_s10 = sadd.s32 1, %s2618_s22 }
  0x68   : > { %s1933_s7 = sshll.u32 %s261_s26, 7  ;;  %p3644_p4 = scmp.eq.s32.totalorder %s2862_s16, 0 }
  0x69   : > { %p88_p13 = scmp.ne.s32.totalorder %s2618_s22, %s2614_s21  ;;  %s251_s13 = sand.u32 1, %s2658_s6  }
  0x6a   : > { %s2925_s20 = scalar_select %p3644_p4, %s2618_s22, %s81_s10  }
  0x6b   : > { %s2933_s17 = scalar_lea.hbm %s3597_s1, %s1933_s7  ;;  %s253_s2 = sand.u32 1, %s2618_s22  }
  0x6c   : > { %p3645_p5 = scmp.eq.s32.totalorder %s2658_s6, 0  ;;  %s1930_s23 = sshll.u32 %s253_s2, 7 }
  0x6d   : > { %s255_s4 = scalar_lea.vmem [#allocation10], %s1930_s23  ;;  %p3646_p11 = scmp.lt.s32.totalorder %s2658_s6, 8 }
  0x6e   : > { %p90_p7 = por %p88_p13, %p3645_p5  ;;  %s264_s8 = sshll.u32 %s255_s4, 4  ;;  %s2944_s8 = int_to_ptr.vmem [resolvable:$true] %s264_s8 }
  0x6f   : > { %s2946_s5 = scalar_lea.sflag [#allocation11], %s251_s13  ;;  %s2482_s27 = scalar_lea.hbm %s2933_s17, 2048 }
  0x70   : > { %p2940_p3 = pnand %p3646_p11, %p90_p7  ;;  %p2483_p0 = scmp.ne.s32.totalorder %s2933_s17, %s2482_s27 }
  0x71   : > { %s2487_s7 = scalar_lea.hbm %s3597_s1, 8192  ;;  %p2488_p6 = scmp.lt.u32.totalorder %s2933_s17, %s3597_s1 }
  0x72   : > { %p2484_p2 = pneg %p2940_p3  ;;  %p2489_p8 = scmp.lt.u32.totalorder %s2487_s7, %s2482_s27 }
  0x73   : > { %p2491_p4 = scmp.lt.u32.totalorder %s2482_s27, %s2933_s17 }
  0x74   : > { %p2485_p9 = pnand %p2484_p2, %p2483_p0  ;;  %p2490_p10 = por %p2489_p8, %p2488_p6 }
  0x76   : > { %p2486_p1 = pneg %p2485_p9  ;;  %p2492_p13 = por %p2491_p4, %p2490_p10 }
  0x78   : > { %p2493_p5 = pnand %p2492_p13, %p2486_p1 }
  0x7a   : > { %2496 = shalt.err (!%p2493_p5)
}
  0x7b   : > { %s2497_s13 = scalar_lea.vmem %s2944_s8, 2048  ;;  %s2666_s14 = smov [#allocation10]  }
  0x7c   : > { %p2498_p7 = scmp.ne.s32.totalorder %s2944_s8, %s2497_s13  ;;  %s2502_s2 = sshll.u32 %s2666_s14, 4  ;;  %s2503_s2 = int_to_ptr.vmem [resolvable:$false] %s2502_s2 }
  0x7d   : > { %s2504_s23 = scalar_lea.vmem %s2503_s2, 4096  ;;  %p2505_p9 = scmp.lt.s32.totalorder %s2944_s8, %s2503_s2 }
  0x7e   : > { %p2500_p11 = pnand %p2498_p7, %p2484_p2  ;;  %p2506_p6 = scmp.lt.s32.totalorder %s2504_s23, %s2497_s13 }
  0x80   : > { %p2501_p0 = pneg %p2500_p11  ;;  %p2507_p8 = por %p2506_p6, %p2505_p9 }
  0x82   : > { %p2508_p10 = pnand %p2507_p8, %p2501_p0 }
  0x84   : > { %2511 = shalt.err (!%p2508_p10)
}
  0x85   : > { %2168 = dma.hbm_to_vmem [thread:$0]  (!%p2940_p3), %s2933_s17, 2048, %s2944_s8, %s2946_s5, %s2664_s11, %s2664_s11, %s2665_s19  }
  0x86   : > { %p3648_p2 = scmp.ne.s32.totalorder %s3633_s12, 0 }
  0x87   : > { %s2980_s4 = sand.u32 (!%p3648_p2), 1, %s2626_s24   ;;  %p3649_p1 = scmp.ne.s32.totalorder (!%p3648_p2), %s3628_s9, 0 }
  0x88   : > { %276 = sbr.rel (%p3648_p2) target bundleno = 1667 (0x683), region = 40  ;;  %s1935_s27 = sshll.u32 (!%p3648_p2), %s2980_s4, 7 }
  0x89   : > { %s279_s18 = scalar_lea.sflag (!%p3648_p2), [#allocation8], %s2980_s4  ;;  %s2984_s26 = scalar_lea.vmem (!%p3648_p2), [#allocation7], %s1935_s27 }
  0x8f   : > { %2593 = dma.done.wait (%p3649_p1), %s279_s18, 2048  }
  0x90   : > { %2595 = vsyncadd (%p3649_p1), %s279_s18, 4294965248  ;;  %s3650_s16 = sld [smem:[#allocation22_spill]]  ;;  %s3651_s11 = sld [smem:[#allocation23_spill]] }
  0x91   : > { %s289_s19 = sand.u32 1, %s2614_s21  }
  0x92   : > { %s1936_s17 = sshll.u32 %s289_s19, 7 }
  0x93   : > { %s2992_s5 = scalar_lea.vmem [#allocation10], %s1936_s17 }
  0x96   : > { %s287_s12 = sand.u32 1, %s3650_s16   ;;  %p3652_p3 = scmp.ne.s32.totalorder %s3651_s11, 0 }
  0x97   : > { %s288_s8 = scalar_lea.sflag [#allocation11], %s287_s12 }
  0x98   : > { %2597 = dma.done.wait (%p3652_p3), %s288_s8, 2048  }
  0x99   : > { %2599 = vsyncadd (%p3652_p3), %s288_s8, 4294965248  ;;  %p3653_p4 = scmp.eq.s32.totalorder %s3650_s16, 0 }
  0x9b   : > { %2601 = dma.done.wait (%p3653_p4), [#allocation11], 3072   ;;  %p3654_p13 = pmov %p3653_p4 }
  0x9c   : > { %s3002_s9 = scalar_lea.vmem [#allocation13], %s1935_s27  ;;  %s3655_s7 = sld [smem:[#allocation19_spill]] }
  0x9d   : > { %2603 = vsyncadd (%p3654_p13), [#allocation11], 4294964224 }
  0xa2   : > { %p1939_p5 = scmp.ne.s32.totalorder %s3655_s7, 0 }
  0xa3   : > { %v2292_v0 = vld [vmem:[#allocation12] ss:$12 sps:$4 sm:$0xff] (!%p1939_p5)   ;;  %v2293_v1 = vld [vmem:[#allocation12 + $0x18] ss:$12 sps:$4 sm:$0xff] (!%p1939_p5)   ;;  %v2294_v2 = vld [vmem:[#allocation12 + $0x30] ss:$12 sps:$4 sm:$0xff] (!%p1939_p5)  }
  0xa4   : > { %334 = sbr.rel (%p1939_p5) target bundleno = 424 (0x1a8), region = 56  ;;  %2020 = vmatprep.subr.bf16.mxu0 (!%p1939_p5), %v2292_v0  ;;  %2116 = vmatprep.subr.bf16.mxu1 (!%p1939_p5), %v2292_v0  ;;  %v2295_v3 = vld [vmem:[#allocation12 + $0x48] ss:$12 sps:$4 sm:$0xff] (!%p1939_p5)   ;;  %v335_v4 = vld [vmem:[%s2984_s26] sm:$0xff] (!%p1939_p5)  ;;  %v2298_v12 = vld [vmem:[#allocation12 + $0x90] ss:$12 sps:$4 sm:$0xff] (!%p1939_p5)  }
  0xa5   : > { %2021 = vmatpush3.bf16.msra.mxu0 (!%p1939_p5), %v2292_v0  ;;  %2124 = vmatpush3.bf16.msra.mxu1 (!%p1939_p5), %v2292_v0  ;;  %v336_v5 = vld [vmem:[%s2984_s26 + $0x8] sm:$0xff] (!%p1939_p5)  ;;  %v343_v6 = vld [vmem:[%s2984_s26 + $0x40] sm:$0xff] (!%p1939_p5)  ;;  %v337_v14 = vld [vmem:[%s2984_s26 + $0x10] sm:$0xff] (!%p1939_p5)  ;;  %vm543_vm0 = vcmask (!%p1939_p5), 7168   ;;  %v2667_v32 = vmov (!%p1939_p5), -inf   ;;  %v2668_v33 = vmov (!%p1939_p5), 0.0  }
  0xa6   : > { %2022 = vmatprep.subr.bf16.mxu0 (!%p1939_p5), %v2293_v1  ;;  %2117 = vmatprep.subr.bf16.mxu1 (!%p1939_p5), %v2293_v1  ;;  %v351_v7 = vpack.c.bf16 (!%p1939_p5), %v336_v5, %v335_v4  ;;  %v344_v8 = vld [vmem:[%s2984_s26 + $0x48] sm:$0xff] (!%p1939_p5)  ;;  %v2297_v11 = vld [vmem:[#allocation12 + $0x78] ss:$12 sps:$4 sm:$0xff] (!%p1939_p5)   ;;  %v345_v16 = vld [vmem:[%s2984_s26 + $0x50] sm:$0xff] (!%p1939_p5)  ;;  %544 = vst.msk [vmem:[#allocation3] sm:$0xff] (!%p1939_p5), %vm543_vm0, %v2667_v32  ;;  %s3656_s13 = sld [smem:[#allocation30_spill]] (!%p1939_p5) }
  0xa7   : > { %v355_v9 = vpack.c.bf16 (!%p1939_p5), %v344_v8, %v343_v6  ;;  %v2296_v10 = vld [vmem:[#allocation12 + $0x60] ss:$12 sps:$4 sm:$0xff] (!%p1939_p5)   ;;  %v2299_v13 = vld [vmem:[#allocation12 + $0xa8] ss:$12 sps:$4 sm:$0xff] (!%p1939_p5)   ;;  %v338_v15 = vld [vmem:[%s2984_s26 + $0x18] sm:$0xff] (!%p1939_p5)  ;;  %545 = vst.msk [vmem:[#allocation3 + $0x8] sm:$0xff] (!%p1939_p5), %vm543_vm0, %v2667_v32 }
  0xa8   : > { %2036 = vmatprep.mubr.bf16.mxu0 (!%p1939_p5), %v351_v7  ;;  %v346_v17 = vld [vmem:[%s2984_s26 + $0x58] sm:$0xff] (!%p1939_p5)  ;;  %v339_v18 = vld [vmem:[%s2984_s26 + $0x20] sm:$0xff] (!%p1939_p5)  ;;  %v340_v19 = vld [vmem:[%s2984_s26 + $0x28] sm:$0xff] (!%p1939_p5)  ;;  %v352_v22 = vpack.c.bf16 (!%p1939_p5), %v338_v15, %v337_v14  ;;  %546 = vst.msk [vmem:[#allocation3 + $0x10] sm:$0xff] (!%p1939_p5), %vm543_vm0, %v2667_v32 }
  0xa9   : > { %2023 = vmatpush3.bf16.msra.mxu0 (!%p1939_p5), %v2293_v1  ;;  %2125 = vmatpush3.bf16.msra.mxu1 (!%p1939_p5), %v2293_v1  ;;  %v347_v20 = vld [vmem:[%s2984_s26 + $0x60] sm:$0xff] (!%p1939_p5)  ;;  %v348_v21 = vld [vmem:[%s2984_s26 + $0x68] sm:$0xff] (!%p1939_p5)  ;;  %v356_v23 = vpack.c.bf16 (!%p1939_p5), %v346_v17, %v345_v16  ;;  %v353_v24 = vpack.c.bf16 (!%p1939_p5), %v340_v19, %v339_v18  ;;  %v341_v26 = vld [vmem:[%s2984_s26 + $0x30] sm:$0xff] (!%p1939_p5)  ;;  %547 = vst.msk [vmem:[#allocation3 + $0x18] sm:$0xff] (!%p1939_p5), %vm543_vm0, %v2667_v32 }
  0xaa   : > { %2024 = vmatprep.subr.bf16.mxu0 (!%p1939_p5), %v2294_v2  ;;  %2118 = vmatprep.subr.bf16.mxu1 (!%p1939_p5), %v2294_v2  ;;  %v357_v25 = vpack.c.bf16 (!%p1939_p5), %v348_v21, %v347_v20  ;;  %v342_v27 = vld [vmem:[%s2984_s26 + $0x38] sm:$0xff] (!%p1939_p5)  ;;  %v349_v28 = vld [vmem:[%s2984_s26 + $0x70] sm:$0xff] (!%p1939_p5)  ;;  %548 = vst.msk [vmem:[#allocation3 + $0x20] sm:$0xff] (!%p1939_p5), %vm543_vm0, %v2667_v32  ;;  %549 = vst.msk [vmem:[#allocation3 + $0x28] sm:$0xff] (!%p1939_p5), %vm543_vm0, %v2667_v32 }
  0xab   : > { %2044 = vmatprep.mubr.bf16.mxu1 %v355_v9  ;;  %v350_v29 = vld [vmem:[%s2984_s26 + $0x78] sm:$0xff]  ;;  %v354_v30 = vpack.c.bf16 %v342_v27, %v341_v26  ;;  %550 = vst.msk [vmem:[#allocation3 + $0x30] sm:$0xff] %vm543_vm0, %v2667_v32  ;;  %551 = vst.msk [vmem:[#allocation3 + $0x38] sm:$0xff] %vm543_vm0, %v2667_v32 }
  0xac   : > { %v358_v31 = vpack.c.bf16 %v350_v29, %v349_v28  ;;  %552 = vst.msk [vmem:[#allocation3 + $0x40] sm:$0xff] %vm543_vm0, %v2667_v32  ;;  %553 = vst.msk [vmem:[#allocation3 + $0x48] sm:$0xff] %vm543_vm0, %v2667_v32  ;;  %v1940_v35 = vld [vmem:[%s3656_s13] ss:$0 sm:$0xff] }
  0xad   : > { %2025 = vmatpush3.bf16.msra.mxu0 %v2294_v2  ;;  %2126 = vmatpush3.bf16.msra.mxu1 %v2294_v2  ;;  %554 = vst.msk [vmem:[#allocation3 + $0x50] sm:$0xff] %vm543_vm0, %v2667_v32  ;;  %555 = vst.msk [vmem:[#allocation3 + $0x58] sm:$0xff] %vm543_vm0, %v2667_v32 }
  0xae   : > { %2026 = vmatprep.subr.bf16.mxu0 %v2295_v3  ;;  %2119 = vmatprep.subr.bf16.mxu1 %v2295_v3  ;;  %556 = vst.msk [vmem:[#allocation3 + $0x60] sm:$0xff] %vm543_vm0, %v2667_v32  ;;  %557 = vst.msk [vmem:[#allocation3 + $0x68] sm:$0xff] %vm543_vm0, %v2667_v32 }
  0xaf   : > { %558 = vst.msk [vmem:[#allocation3 + $0x70] sm:$0xff] %vm543_vm0, %v2667_v32  ;;  %559 = vst.msk [vmem:[#allocation3 + $0x78] sm:$0xff] %vm543_vm0, %v2667_v32 }
  0xb0   : > { %560 = vst.msk [vmem:[#allocation4] sm:$0xff] %vm543_vm0, %v2668_v33  ;;  %561 = vst.msk [vmem:[#allocation4 + $0x8] sm:$0xff] %vm543_vm0, %v2668_v33 }
  0xb1   : > { %2027 = vmatpush3.bf16.msra.mxu0 %v2295_v3  ;;  %2127 = vmatpush3.bf16.msra.mxu1 %v2295_v3  ;;  %562 = vst.msk [vmem:[#allocation4 + $0x10] sm:$0xff] %vm543_vm0, %v2668_v33  ;;  %563 = vst.msk [vmem:[#allocation4 + $0x18] sm:$0xff] %vm543_vm0, %v2668_v33 }
  0xb2   : > { %2028 = vmatprep.subr.bf16.mxu0 %v2296_v10  ;;  %2120 = vmatprep.subr.bf16.mxu1 %v2296_v10  ;;  %564 = vst.msk [vmem:[#allocation4 + $0x20] sm:$0xff] %vm543_vm0, %v2668_v33  ;;  %565 = vst.msk [vmem:[#allocation4 + $0x28] sm:$0xff] %vm543_vm0, %v2668_v33 }
  0xb3   : > { %566 = vst.msk [vmem:[#allocation4 + $0x30] sm:$0xff] %vm543_vm0, %v2668_v33  ;;  %567 = vst.msk [vmem:[#allocation4 + $0x38] sm:$0xff] %vm543_vm0, %v2668_v33 }
  0xb4   : > { %568 = vst.msk [vmem:[#allocation4 + $0x40] sm:$0xff] %vm543_vm0, %v2668_v33  ;;  %569 = vst.msk [vmem:[#allocation4 + $0x48] sm:$0xff] %vm543_vm0, %v2668_v33 }
  0xb5   : > { %2029 = vmatpush3.bf16.msra.mxu0 %v2296_v10  ;;  %2128 = vmatpush3.bf16.msra.mxu1 %v2296_v10  ;;  %570 = vst.msk [vmem:[#allocation4 + $0x50] sm:$0xff] %vm543_vm0, %v2668_v33  ;;  %571 = vst.msk [vmem:[#allocation4 + $0x58] sm:$0xff] %vm543_vm0, %v2668_v33 }
  0xb6   : > { %2030 = vmatprep.subr.bf16.mxu0 %v2297_v11  ;;  %2121 = vmatprep.subr.bf16.mxu1 %v2297_v11  ;;  %572 = vst.msk [vmem:[#allocation4 + $0x60] sm:$0xff] %vm543_vm0, %v2668_v33  ;;  %573 = vst.msk [vmem:[#allocation4 + $0x68] sm:$0xff] %vm543_vm0, %v2668_v33 }
  0xb7   : > { %574 = vst.msk [vmem:[#allocation4 + $0x70] sm:$0xff] %vm543_vm0, %v2668_v33  ;;  %575 = vst.msk [vmem:[#allocation4 + $0x78] sm:$0xff] %vm543_vm0, %v2668_v33 }
  0xb8   : > { %576 = vst [vmem:[#allocation5] sm:$0xff] %v2668_v33  ;;  %577 = vst [vmem:[#allocation5 + $0x8] sm:$0xff] %v2668_v33 }
  0xb9   : > { %2031 = vmatpush3.bf16.msra.mxu0 %v2297_v11  ;;  %2129 = vmatpush3.bf16.msra.mxu1 %v2297_v11  ;;  %578 = vst [vmem:[#allocation5 + $0x10] sm:$0xff] %v2668_v33  ;;  %579 = vst [vmem:[#allocation5 + $0x18] sm:$0xff] %v2668_v33 }
  0xba   : > { %2032 = vmatprep.subr.bf16.mxu0 %v2298_v12  ;;  %2122 = vmatprep.subr.bf16.mxu1 %v2298_v12  ;;  %580 = vst [vmem:[#allocation5 + $0x20] sm:$0xff] %v2668_v33  ;;  %581 = vst [vmem:[#allocation5 + $0x28] sm:$0xff] %v2668_v33 }
  0xbb   : > { %582 = vst [vmem:[#allocation5 + $0x30] sm:$0xff] %v2668_v33  ;;  %583 = vst [vmem:[#allocation5 + $0x38] sm:$0xff] %v2668_v33 }
  0xbc   : > { %584 = vst [vmem:[#allocation5 + $0x40] sm:$0xff] %v2668_v33  ;;  %585 = vst [vmem:[#allocation5 + $0x48] sm:$0xff] %v2668_v33 }
  0xbd   : > { %2033 = vmatpush3.bf16.msra.mxu0 %v2298_v12  ;;  %2130 = vmatpush3.bf16.msra.mxu1 %v2298_v12  ;;  %586 = vst [vmem:[#allocation5 + $0x50] sm:$0xff] %v2668_v33  ;;  %587 = vst [vmem:[#allocation5 + $0x58] sm:$0xff] %v2668_v33 }
  0xbe   : > { %2034 = vmatprep.subr.bf16.mxu0 %v2299_v13  ;;  %2123 = vmatprep.subr.bf16.mxu1 %v2299_v13  ;;  %588 = vst [vmem:[#allocation5 + $0x60] sm:$0xff] %v2668_v33  ;;  %589 = vst [vmem:[#allocation5 + $0x68] sm:$0xff] %v2668_v33 }
  0xbf   : > { %590 = vst [vmem:[#allocation5 + $0x70] sm:$0xff] %v2668_v33  ;;  %591 = vst [vmem:[#allocation5 + $0x78] sm:$0xff] %v2668_v33 }
  0xc1   : > { %2035 = vmatpush3.bf16.msra.mxu0 %v2299_v13  ;;  %2131 = vmatpush3.bf16.msra.mxu1 %v2299_v13 }
  0xc4   : > { %2037 = vmatmul.mubr.bf16.vlgmr.msra.gmra.mrb[0].mxu0 %v352_v22  ;;  %2045 = vmatmul.mubr.bf16.vlgmr.msra.gmra.mrb[0].mxu1 %v356_v23 }
  0xc5   : > { %2040 = vmatprep.mubr.bf16.mxu0 %v353_v24  ;;  %2048 = vmatprep.mubr.bf16.mxu1 %v357_v25 }
  0xcc   : > { %2041 = vmatmul.mubr.bf16.gmra.mrb[4].mxu0 %v354_v30  ;;  %2049 = vmatmul.mubr.bf16.gmra.mrb[4].mxu1 %v358_v31 }
 0x197   : > { %v2038_v34 = vpop.f32.mrb[0].mxu0  ;;  %v2046_v36 = vpop.f32.mrb[0].mxu1 }
 0x198   : > { %v464_v37 = vpop.f32.mrb[1].mxu0  ;;  %v496_v38 = vpop.f32.mrb[1].mxu1  ;;  %v473_v41 = vadd.f32 %v2038_v34, %v1940_v35  ;;  %v505_v42 = vadd.f32 %v2046_v36, %v1940_v35 }
 0x199   : > { %v2039_v39 = vpop.f32.mrb[2].mxu0  ;;  %v2047_v40 = vpop.f32.mrb[2].mxu1  ;;  %v465_v47 = vadd.f32 %v1940_v35, %v464_v37  ;;  %v497_v48 = vadd.f32 %v1940_v35, %v496_v38 }
 0x19a   : > { %v476_v43 = vadd.f32 %v2039_v39, %v1940_v35  ;;  %v508_v44 = vadd.f32 %v2047_v40, %v1940_v35  ;;  %v467_v45 = vpop.f32.mrb[3].mxu0  ;;  %v499_v46 = vpop.f32.mrb[3].mxu1 }
 0x19b   : > { %v468_v49 = vadd.f32 %v1940_v35, %v467_v45  ;;  %v500_v50 = vadd.f32 %v1940_v35, %v499_v46 }
 0x19c   : > { %v528_v51 = vpack.c.bf16 %v476_v43, %v473_v41  ;;  %v532_v52 = vpack.c.bf16 %v508_v44, %v505_v42 }
 0x19d   : > { %v527_v53 = vpack.c.bf16 %v468_v49, %v465_v47  ;;  %v531_v54 = vpack.c.bf16 %v500_v50, %v497_v48 }
 0x19e   : > { %536 = vst [vmem:[#allocation2 + $0x8] sm:$0xff] %v528_v51  ;;  %540 = vst [vmem:[#allocation2 + $0x28] sm:$0xff] %v532_v52 }
 0x19f   : > { %535 = vst [vmem:[#allocation2] sm:$0xff] %v527_v53  ;;  %539 = vst [vmem:[#allocation2 + $0x20] sm:$0xff] %v531_v54  ;;  %v2042_v55 = vpop.f32.mrb[4].mxu0  ;;  %v2050_v56 = vpop.f32.mrb[4].mxu1 }
 0x1a0   : > { %v480_v57 = vpop.f32.mrb[5].mxu0  ;;  %v512_v58 = vpop.f32.mrb[5].mxu1  ;;  %v489_v61 = vadd.f32 %v2042_v55, %v1940_v35  ;;  %v521_v62 = vadd.f32 %v2050_v56, %v1940_v35 }
 0x1a1   : > { %v2043_v59 = vpop.f32.mrb[6].mxu0  ;;  %v2051_v60 = vpop.f32.mrb[6].mxu1  ;;  %v481_v3 = vadd.f32 %v1940_v35, %v480_v57  ;;  %v513_v4 = vadd.f32 %v1940_v35, %v512_v58 }
 0x1a2   : > { %v492_v63 = vadd.f32 %v2043_v59, %v1940_v35  ;;  %v524_v0 = vadd.f32 %v2051_v60, %v1940_v35  ;;  %v483_v1 = vpop.f32.mrb[7].mxu0  ;;  %v515_v2 = vpop.f32.mrb[7].mxu1 }
 0x1a3   : > { %v484_v5 = vadd.f32 %v1940_v35, %v483_v1  ;;  %v516_v6 = vadd.f32 %v1940_v35, %v515_v2 }
 0x1a4   : > { %v530_v7 = vpack.c.bf16 %v492_v63, %v489_v61  ;;  %v534_v8 = vpack.c.bf16 %v524_v0, %v521_v62 }
 0x1a5   : > { %v529_v9 = vpack.c.bf16 %v484_v5, %v481_v3  ;;  %v533_v10 = vpack.c.bf16 %v516_v6, %v513_v4 }
 0x1a6   : > { %538 = vst [vmem:[#allocation2 + $0x18] sm:$0xff] %v530_v7  ;;  %542 = vst [vmem:[#allocation2 + $0x38] sm:$0xff] %v534_v8 }
 0x1a7   : > { %537 = vst [vmem:[#allocation2 + $0x10] sm:$0xff] %v529_v9  ;;  %541 = vst [vmem:[#allocation2 + $0x30] sm:$0xff] %v533_v10 }
 0x1a8 PF: > { %v2302_v11 = vld [vmem:[#allocation12 + $0x8] ss:$12 sps:$4 sm:$0xff]   ;;  %v2304_v12 = vld [vmem:[#allocation12 + $0x4] ss:$12 sps:$4 sm:$0xff]   ;;  %v2669_v13 = vmov 0   ;;  %v595_v32 = vld [vmem:[%s2992_s5 + $0x18] sm:$0xff]  ;;  %v634_v53 = vlaneseq }
 0x1a9   : > { %756 = vmatprep.mubr.bf16.mxu0 %v2669_v13  ;;  %2300 = vset.pattern.permute.xlu1 %v2669_v13  ;;  %v2305_v14 = vld [vmem:[#allocation12 + $0x20] ss:$12 sps:$4 sm:$0xff]   ;;  %v2307_v15 = vld [vmem:[#allocation12 + $0x1c] ss:$12 sps:$4 sm:$0xff]   ;;  %v2308_v16 = vld [vmem:[#allocation12 + $0x38] ss:$12 sps:$4 sm:$0xff]  }
 0x1aa   : > { %724 = vmatprep.subr.bf16.mxu0 %v2302_v11  ;;  %2301 = vset.pattern.permute.xlu0 %v2669_v13  ;;  %v2310_v17 = vld [vmem:[#allocation12 + $0x34] ss:$12 sps:$4 sm:$0xff]   ;;  %v2311_v18 = vld [vmem:[#allocation12 + $0x50] ss:$12 sps:$4 sm:$0xff]   ;;  %v2313_v19 = vld [vmem:[#allocation12 + $0x4c] ss:$12 sps:$4 sm:$0xff]  }
 0x1ab   : > { %725 = vmatpush1.bf16.msra.mxu0 %v2304_v12  ;;  %v2314_v20 = vld [vmem:[#allocation12 + $0x68] ss:$12 sps:$4 sm:$0xff]   ;;  %v2316_v21 = vld [vmem:[#allocation12 + $0x64] ss:$12 sps:$4 sm:$0xff]   ;;  %v2317_v22 = vld [vmem:[#allocation12 + $0x80] ss:$12 sps:$4 sm:$0xff]  }
 0x1ac   : > { %726 = vmatprep.subr.bf16.mxu0 %v2305_v14  ;;  %v2319_v23 = vld [vmem:[#allocation12 + $0x7c] ss:$12 sps:$4 sm:$0xff]   ;;  %v2320_v24 = vld [vmem:[#allocation12 + $0x98] ss:$12 sps:$4 sm:$0xff]   ;;  %v2322_v25 = vld [vmem:[#allocation12 + $0x94] ss:$12 sps:$4 sm:$0xff]  }
 0x1ad   : > { %v2323_v26 = vld [vmem:[#allocation12 + $0xb0] ss:$12 sps:$4 sm:$0xff]   ;;  %v2325_v27 = vld [vmem:[#allocation12 + $0xac] ss:$12 sps:$4 sm:$0xff]   ;;  %v592_v28 = vld [vmem:[%s2992_s5] sm:$0xff]  ;;  %v635_v54 = vshrl.u32 %v634_v53, 7 }
 0x1ae   : > { %v593_v29 = vld [vmem:[%s2992_s5 + $0x8] sm:$0xff]  ;;  %v594_v31 = vld [vmem:[%s2992_s5 + $0x10] sm:$0xff]  ;;  %v596_v34 = vld [vmem:[%s2992_s5 + $0x20] sm:$0xff]  ;;  %s3657_s23 = sld [smem:[#allocation30_spill]]  ;;  %vm1278_vm1 = vcmask 7168   ;;  %s3658_s27 = sld [smem:[#allocation19_spill]] }
 0x1af   : > { %727 = vmatpush1.bf16.msra.mxu0 %v2307_v15  ;;  %v608_v30 = vpack.c.bf16 %v593_v29, %v592_v28  ;;  %v609_v33 = vpack.c.bf16 %v595_v32, %v594_v31  ;;  %v597_v35 = vld [vmem:[%s2992_s5 + $0x28] sm:$0xff]  ;;  %v598_v37 = vld [vmem:[%s2992_s5 + $0x30] sm:$0xff]  ;;  %v599_v38 = vld [vmem:[%s2992_s5 + $0x38] sm:$0xff]  ;;  %v636_v55 = vsub.s32 0, %v635_v54  ;;  %v640_v57 = vsub.s32 1, %v635_v54 }
 0x1b0   : > { %728 = vmatprep.subr.bf16.mxu0 %v2308_v16  ;;  %v610_v36 = vpack.c.bf16 %v597_v35, %v596_v34  ;;  %v611_v39 = vpack.c.bf16 %v599_v38, %v598_v37  ;;  %v600_v40 = vld [vmem:[%s2992_s5 + $0x40] sm:$0xff]  ;;  %v601_v41 = vld [vmem:[%s2992_s5 + $0x48] sm:$0xff]  ;;  %v602_v43 = vld [vmem:[%s2992_s5 + $0x50] sm:$0xff] }
 0x1b1   : > { %v612_v42 = vpack.c.bf16 %v601_v41, %v600_v40  ;;  %v603_v44 = vld [vmem:[%s2992_s5 + $0x58] sm:$0xff]  ;;  %v604_v46 = vld [vmem:[%s2992_s5 + $0x60] sm:$0xff]  ;;  %v605_v47 = vld [vmem:[%s2992_s5 + $0x68] sm:$0xff] }
 0x1b2   : > { %v613_v45 = vpack.c.bf16 %v603_v44, %v602_v43  ;;  %v614_v48 = vpack.c.bf16 %v605_v47, %v604_v46  ;;  %v606_v49 = vld [vmem:[%s2992_s5 + $0x70] sm:$0xff]  ;;  %v607_v50 = vld [vmem:[%s2992_s5 + $0x78] sm:$0xff]  ;;  %v853_v52 = vld [vmem:[#allocation2] sm:$0xff] }
 0x1b3   : > { %729 = vmatpush1.bf16.msra.mxu0 %v2310_v17  ;;  %v615_v51 = vpack.c.bf16 %v607_v50, %v606_v49  ;;  %2068 = vmatprep.mubr.bf16.mxu1 %v853_v52 }
 0x1b4   : > { %730 = vmatprep.subr.bf16.mxu0 %v2311_v18  ;;  %v632_v56 = vld [vmem:[%s3657_s23 + $0x1] sm:$0x3]  ;;  %p1965_p7 = scmp.ne.s32.totalorder %s3658_s27, 1 }
 0x1b5   : > { %v3085_v58 = vrot.slane %v632_v56, %v636_v55  ;;  %v3087_v60 = vrot.slane %v632_v56, %v640_v57  ;;  %s1724_s18 = sld [smem:[#allocation6]] (!%p1965_p7) }
 0x1b7   : > { %731 = vmatpush1.bf16.msra.mxu0 %v2313_v19 }
 0x1b8   : > { %732 = vmatprep.subr.bf16.mxu0 %v2314_v20 }
 0x1bb   : > { %733 = vmatpush1.bf16.msra.mxu0 %v2316_v21 }
 0x1bc   : > { %734 = vmatprep.subr.bf16.mxu0 %v2317_v22 }
 0x1bf   : > { %735 = vmatpush1.bf16.msra.mxu0 %v2319_v23 }
 0x1c0   : > { %736 = vmatprep.subr.bf16.mxu0 %v2320_v24 }
 0x1c3   : > { %737 = vmatpush1.bf16.msra.mxu0 %v2322_v25 }
 0x1c4   : > { %738 = vmatprep.subr.bf16.mxu0 %v2323_v26 }
 0x1c7   : > { %739 = vmatpush1.bf16.msra.mxu0 %v2325_v27 }
 0x1ca   : > { %757 = vmatmul.mubr.bf16.vlgmr.msra.gmra.mrb[0].mxu0 %v608_v30 }
 0x1cb   : > { %766 = vmatprep.mubr.bf16.mxu0 %v2669_v13 }
 0x1d2   : > { %767 = vmatmul.mubr.bf16.gmra.mrb[4].mxu0 %v609_v33 }
 0x1d3   : > { %776 = vmatprep.mubr.bf16.mxu0 %v2669_v13 }
 0x1da   : > { %777 = vmatmul.mubr.bf16.gmra.mrb[8].mxu0 %v610_v36 }
 0x1db   : > { %786 = vmatprep.mubr.bf16.mxu0 %v2669_v13 }
 0x1e2   : > { %787 = vmatmul.mubr.bf16.gmra.mrb[12].mxu0 %v611_v39 }
 0x1e3   : > { %796 = vmatprep.mubr.bf16.mxu0 %v2669_v13 }
 0x1ea   : > { %797 = vmatmul.mubr.bf16.gmra.mrb[16].mxu0 %v612_v42 }
 0x1eb   : > { %806 = vmatprep.mubr.bf16.mxu0 %v2669_v13 }
 0x1f2   : > { %807 = vmatmul.mubr.bf16.gmra.mrb[20].mxu0 %v613_v45 }
 0x1f3   : > { %816 = vmatprep.mubr.bf16.mxu0 %v2669_v13 }
 0x1fa   : > { %817 = vmatmul.mubr.bf16.gmra.mrb[24].mxu0 %v614_v48 }
 0x1fb   : > { %826 = vmatprep.mubr.bf16.mxu0 %v2669_v13 }
 0x202   : > { %827 = vmatmul.mubr.bf16.gmra.mrb[28].mxu0 %v615_v51 }
 0x29d   : > { %v758_v59 = vpop.f32.mrb[0].mxu0 }
 0x29e   : > { %v760_v61 = vpop.f32.mrb[1].mxu0  ;;  %v759_v63 = vadd.f32 %v758_v59, %v3085_v58 }
 0x29f   : > { %v762_v62 = vpop.f32.mrb[2].mxu0  ;;  %v761_v2 = vadd.f32 %v760_v61, %v3087_v60 }
 0x2a0   : > { %v763_v0 = vadd.f32 %v762_v62, %v3085_v58  ;;  %v764_v1 = vpop.f32.mrb[3].mxu0 }
 0x2a1   : > { %v765_v3 = vadd.f32 %v764_v1, %v3087_v60 }
 0x2a2   : > { %v837_v4 = vpack.c.bf16 %v763_v0, %v759_v63 }
 0x2a3   : > { %v3093_v5 = vpack.c.bf16 %v765_v3, %v761_v2 }
 0x2a4   : > { %2052 = vmatprep.subr.bf16.mxu1 %v837_v4 }
 0x2a5   : > { %v768_v6 = vpop.f32.mrb[4].mxu0  ;;  %2053 = vmatpush3.bf16.xpose.msra.mxu1 %v837_v4  ;;  %2084 = vmatprep.subr.bf16.mxu0 %v3093_v5 }
 0x2a6   : > { %v770_v7 = vpop.f32.mrb[5].mxu0  ;;  %2085 = vmatpush3.bf16.msra.mxu0 %v3093_v5  ;;  %v769_v9 = vadd.f32 %v768_v6, %v3085_v58 }
 0x2a7   : > { %v772_v8 = vpop.f32.mrb[6].mxu0  ;;  %v771_v12 = vadd.f32 %v770_v7, %v3087_v60 }
 0x2a8   : > { %v773_v10 = vadd.f32 %v772_v8, %v3085_v58  ;;  %v774_v11 = vpop.f32.mrb[7].mxu0 }
 0x2a9   : > { %v775_v13 = vadd.f32 %v774_v11, %v3087_v60 }
 0x2aa   : > { %v838_v14 = vpack.c.bf16 %v773_v10, %v769_v9 }
 0x2ab   : > { %v3101_v15 = vpack.c.bf16 %v775_v13, %v771_v12 }
 0x2ac   : > { %2054 = vmatprep.subr.bf16.mxu1 %v838_v14 }
 0x2ad   : > { %v778_v16 = vpop.f32.mrb[8].mxu0  ;;  %2055 = vmatpush3.bf16.xpose.msra.mxu1 %v838_v14  ;;  %2086 = vmatprep.subr.bf16.mxu0 %v3101_v15 }
 0x2ae   : > { %v780_v17 = vpop.f32.mrb[9].mxu0  ;;  %2087 = vmatpush3.bf16.msra.mxu0 %v3101_v15  ;;  %v779_v19 = vadd.f32 %v778_v16, %v3085_v58  ;;  %v854_v16 = vld [vmem:[#allocation2 + $0x8] sm:$0xff] }
 0x2af   : > { %v782_v18 = vpop.f32.mrb[10].mxu0  ;;  %v781_v22 = vadd.f32 %v780_v17, %v3087_v60  ;;  %v855_v17 = vld [vmem:[#allocation2 + $0x10] sm:$0xff] }
 0x2b0   : > { %v783_v20 = vadd.f32 %v782_v18, %v3085_v58  ;;  %v784_v21 = vpop.f32.mrb[11].mxu0  ;;  %v858_v18 = vld [vmem:[#allocation2 + $0x28] sm:$0xff] }
 0x2b1   : > { %v785_v23 = vadd.f32 %v784_v21, %v3087_v60 }
 0x2b2   : > { %v839_v24 = vpack.c.bf16 %v783_v20, %v779_v19 }
 0x2b3   : > { %v3109_v25 = vpack.c.bf16 %v785_v23, %v781_v22 }
 0x2b4   : > { %2056 = vmatprep.subr.bf16.mxu1 %v839_v24 }
 0x2b5   : > { %v788_v26 = vpop.f32.mrb[12].mxu0  ;;  %2057 = vmatpush3.bf16.xpose.msra.mxu1 %v839_v24  ;;  %2088 = vmatprep.subr.bf16.mxu0 %v3109_v25 }
 0x2b6   : > { %v790_v27 = vpop.f32.mrb[13].mxu0  ;;  %2089 = vmatpush3.bf16.msra.mxu0 %v3109_v25  ;;  %v789_v29 = vadd.f32 %v788_v26, %v3085_v58 }
 0x2b7   : > { %v792_v28 = vpop.f32.mrb[14].mxu0  ;;  %v791_v32 = vadd.f32 %v790_v27, %v3087_v60 }
 0x2b8   : > { %v793_v30 = vadd.f32 %v792_v28, %v3085_v58  ;;  %v794_v31 = vpop.f32.mrb[15].mxu0 }
 0x2b9   : > { %v795_v33 = vadd.f32 %v794_v31, %v3087_v60 }
 0x2ba   : > { %v840_v34 = vpack.c.bf16 %v793_v30, %v789_v29 }
 0x2bb   : > { %v3117_v35 = vpack.c.bf16 %v795_v33, %v791_v32 }
 0x2bc   : > { %2058 = vmatprep.subr.bf16.mxu1 %v840_v34 }
 0x2bd   : > { %v798_v36 = vpop.f32.mrb[16].mxu0  ;;  %2059 = vmatpush3.bf16.xpose.msra.mxu1 %v840_v34  ;;  %2090 = vmatprep.subr.bf16.mxu0 %v3117_v35 }
 0x2be   : > { %v800_v37 = vpop.f32.mrb[17].mxu0  ;;  %2091 = vmatpush3.bf16.msra.mxu0 %v3117_v35  ;;  %v799_v39 = vadd.f32 %v798_v36, %v3085_v58 }
 0x2bf   : > { %v802_v38 = vpop.f32.mrb[18].mxu0  ;;  %v801_v42 = vadd.f32 %v800_v37, %v3087_v60  ;;  %v3201_v37 = vld [vmem:[#allocation3 + $0x18] sm:$0xff] }
 0x2c0   : > { %v803_v40 = vadd.f32 %v802_v38, %v3085_v58  ;;  %v804_v41 = vpop.f32.mrb[19].mxu0 }
 0x2c1   : > { %v805_v43 = vadd.f32 %v804_v41, %v3087_v60 }
 0x2c2   : > { %v841_v44 = vpack.c.bf16 %v803_v40, %v799_v39  ;;  %v958_v40 = vld [vmem:[#allocation3] sm:$0xff] }
 0x2c3   : > { %v3125_v45 = vpack.c.bf16 %v805_v43, %v801_v42 }
 0x2c4   : > { %2060 = vmatprep.subr.bf16.mxu1 %v841_v44 }
 0x2c5   : > { %v808_v46 = vpop.f32.mrb[20].mxu0  ;;  %2061 = vmatpush3.bf16.xpose.msra.mxu1 %v841_v44  ;;  %2092 = vmatprep.subr.bf16.mxu0 %v3125_v45  ;;  %v3214_v44 = vld [vmem:[#allocation3 + $0x8] sm:$0xff] }
 0x2c6   : > { %v810_v47 = vpop.f32.mrb[21].mxu0  ;;  %2093 = vmatpush3.bf16.msra.mxu0 %v3125_v45  ;;  %v809_v49 = vadd.f32 %v808_v46, %v3085_v58  ;;  %v3218_v46 = vld [vmem:[#allocation3 + $0x38] sm:$0xff] }
 0x2c7   : > { %v812_v48 = vpop.f32.mrb[22].mxu0  ;;  %v811_v52 = vadd.f32 %v810_v47, %v3087_v60 }
 0x2c8   : > { %v813_v50 = vadd.f32 %v812_v48, %v3085_v58  ;;  %v814_v51 = vpop.f32.mrb[23].mxu0 }
 0x2c9   : > { %v815_v53 = vadd.f32 %v814_v51, %v3087_v60 }
 0x2ca   : > { %v842_v54 = vpack.c.bf16 %v813_v50, %v809_v49  ;;  %v3223_v49 = vld [vmem:[#allocation3 + $0x30] sm:$0xff] }
 0x2cb   : > { %v850_v55 = vpack.c.bf16 %v815_v53, %v811_v52  ;;  %v3231_v52 = vld [vmem:[#allocation3 + $0x28] sm:$0xff] }
 0x2cc   : > { %2062 = vmatprep.subr.bf16.mxu1 %v842_v54 }
 0x2cd   : > { %v818_v56 = vpop.f32.mrb[24].mxu0  ;;  %2063 = vmatpush3.bf16.xpose.msra.mxu1 %v842_v54  ;;  %2094 = vmatprep.subr.bf16.mxu0 %v850_v55 }
 0x2ce   : > { %v820_v57 = vpop.f32.mrb[25].mxu0  ;;  %2095 = vmatpush3.bf16.msra.mxu0 %v850_v55  ;;  %v819_v61 = vadd.f32 %v818_v56, %v3085_v58 }
 0x2cf   : > { %v822_v59 = vpop.f32.mrb[26].mxu0  ;;  %v821_v0 = vadd.f32 %v820_v57, %v3087_v60 }
 0x2d0   : > { %v823_v62 = vadd.f32 %v822_v59, %v3085_v58  ;;  %v824_v63 = vpop.f32.mrb[27].mxu0  ;;  %v3243_v59 = vld [vmem:[#allocation3 + $0x40] sm:$0xff] }
 0x2d1   : > { %v825_v1 = vadd.f32 %v824_v63, %v3087_v60  ;;  %v3249_v63 = vld [vmem:[#allocation3 + $0x50] sm:$0xff] }
 0x2d2   : > { %v843_v2 = vpack.c.bf16 %v823_v62, %v819_v61 }
 0x2d3   : > { %v851_v3 = vpack.c.bf16 %v825_v1, %v821_v0 }
 0x2d4   : > { %2064 = vmatprep.subr.bf16.mxu1 %v843_v2 }
 0x2d5   : > { %v828_v4 = vpop.f32.mrb[28].mxu0  ;;  %2065 = vmatpush3.bf16.xpose.msra.mxu1 %v843_v2  ;;  %2096 = vmatprep.subr.bf16.mxu0 %v851_v3  ;;  %v969_v2 = vld [vmem:[#allocation3 + $0x58] sm:$0xff] }
 0x2d6   : > { %v830_v6 = vpop.f32.mrb[29].mxu0  ;;  %2097 = vmatpush3.bf16.msra.mxu0 %v851_v3  ;;  %v829_v8 = vadd.f32 %v828_v4, %v3085_v58 }
 0x2d7   : > { %v832_v7 = vpop.f32.mrb[30].mxu0  ;;  %v831_v11 = vadd.f32 %v830_v6, %v3087_v60 }
 0x2d8   : > { %v833_v9 = vadd.f32 %v832_v7, %v3085_v58  ;;  %v834_v10 = vpop.f32.mrb[31].mxu0  ;;  %v856_v58 = vld [vmem:[#allocation2 + $0x18] sm:$0xff]  ;;  %v3266_v7 = vld [vmem:[#allocation3 + $0x60] sm:$0xff] }
 0x2d9   : > { %v835_v12 = vadd.f32 %v834_v10, %v3087_v60  ;;  %v857_v60 = vld [vmem:[#allocation2 + $0x20] sm:$0xff] }
 0x2da   : > { %v844_v13 = vpack.c.bf16 %v833_v9, %v829_v8  ;;  %v3268_v8 = vld [vmem:[#allocation3 + $0x48] sm:$0xff] }
 0x2db   : > { %v852_v14 = vpack.c.bf16 %v835_v12, %v831_v11 }
 0x2dc   : > { %2066 = vmatprep.subr.bf16.mxu1 %v844_v13 }
 0x2dd   : > { %2067 = vmatpush3.bf16.xpose.msra.mxu1 %v844_v13  ;;  %2098 = vmatprep.subr.bf16.mxu0 %v852_v14 }
 0x2de   : > { %2132 = vmatprep.subr.bf16.mxu1 %v3093_v5  ;;  %2099 = vmatpush3.bf16.msra.mxu0 %v852_v14 }
 0x2e4   : > { %2069 = vmatmul.mubr.bf16.vlgmr.msra.gmra.mrb[0].mxu1 %v854_v16  ;;  %v3280_v16 = vld [vmem:[#allocation3 + $0x78] sm:$0xff] }
 0x2e5   : > { %2140 = vmatpush3.bf16.msra.mxu1 %v3093_v5  ;;  %2072 = vmatprep.mubr.bf16.mxu1 %v855_v17  ;;  %v859_v5 = vld [vmem:[#allocation2 + $0x30] sm:$0xff] }
 0x2e6   : > { %2133 = vmatprep.subr.bf16.mxu1 %v3101_v15 }
 0x2e9   : > { %2141 = vmatpush3.bf16.msra.mxu1 %v3101_v15  ;;  %v860_v15 = vld [vmem:[#allocation2 + $0x38] sm:$0xff] }
 0x2ea   : > { %2134 = vmatprep.subr.bf16.mxu1 %v3109_v25 }
 0x2ec   : > { %2073 = vmatmul.mubr.bf16.gmra.mrb[4].mxu1 %v856_v58 }
 0x2ed   : > { %2142 = vmatpush3.bf16.msra.mxu1 %v3109_v25  ;;  %2076 = vmatprep.mubr.bf16.mxu1 %v857_v60 }
 0x2ee   : > { %2135 = vmatprep.subr.bf16.mxu1 %v3117_v35 }
 0x2f1   : > { %2143 = vmatpush3.bf16.msra.mxu1 %v3117_v35  ;;  %v3199_v35 = vld [vmem:[#allocation3 + $0x10] sm:$0xff] }
 0x2f2   : > { %2136 = vmatprep.subr.bf16.mxu1 %v3125_v45 }
 0x2f4   : > { %2077 = vmatmul.mubr.bf16.gmra.mrb[8].mxu1 %v858_v18 }
 0x2f5   : > { %2144 = vmatpush3.bf16.msra.mxu1 %v3125_v45  ;;  %2080 = vmatprep.mubr.bf16.mxu1 %v859_v5 }
 0x2f6   : > { %2137 = vmatprep.subr.bf16.mxu1 %v850_v55 }
 0x2f9   : > { %2145 = vmatpush3.bf16.msra.mxu1 %v850_v55  ;;  %v3238_v55 = vld [vmem:[#allocation3 + $0x20] sm:$0xff] }
 0x2fa   : > { %2138 = vmatprep.subr.bf16.mxu1 %v851_v3 }
 0x2fc   : > { %2081 = vmatmul.mubr.bf16.gmra.mrb[12].mxu1 %v860_v15 }
 0x2fd   : > { %2146 = vmatpush3.bf16.msra.mxu1 %v851_v3 }
 0x2fe   : > { %2139 = vmatprep.subr.bf16.mxu1 %v852_v14 }
 0x301   : > { %2147 = vmatpush3.bf16.msra.mxu1 %v852_v14  ;;  %v3276_v14 = vld [vmem:[#allocation3 + $0x70] sm:$0xff] }
 0x3b7   : > { %v3151_v19 = vpop.f32.mrb[0].mxu1 }
 0x3b8   : > { %978 = vmax.xlane.f32.xlu0 %v3151_v19  ;;  %v3154_v20 = vpop.f32.mrb[1].mxu1 }
 0x3b9   : > { %v3156_v21 = vpop.f32.mrb[2].mxu1 }
 0x3ba   : > { %980 = vmax.xlane.f32.xlu1 %v3156_v21  ;;  %v3159_v22 = vpop.f32.mrb[3].mxu1 }
 0x3bc   : > { %974 = vmax.xlane.f32.xlu0 %v3154_v20 }
 0x3bf   : > { %v3162_v23 = vpop.f32.mrb[4].mxu1 }
 0x3c0   : > { %976 = vmax.xlane.f32.xlu0 %v3159_v22  ;;  %v3165_v24 = vpop.f32.mrb[5].mxu1 }
 0x3c1   : > { %v3167_v25 = vpop.f32.mrb[6].mxu1 }
 0x3c2   : > { %988 = vmax.xlane.f32.xlu1 %v3167_v25  ;;  %v3170_v26 = vpop.f32.mrb[7].mxu1 }
 0x3c4   : > { %986 = vmax.xlane.f32.xlu0 %v3162_v23 }
 0x3c6   : > { %984 = vmax.xlane.f32.xlu1 %v3170_v26 }
 0x3c7   : > { %v3174_v27 = vpop.f32.mrb[8].mxu1 }
 0x3c8   : > { %982 = vmax.xlane.f32.xlu0 %v3165_v24  ;;  %v3177_v28 = vpop.f32.mrb[9].mxu1 }
 0x3c9   : > { %v3179_v29 = vpop.f32.mrb[10].mxu1 }
 0x3ca   : > { %990 = vmax.xlane.f32.xlu1 %v3177_v28  ;;  %v3182_v30 = vpop.f32.mrb[11].mxu1 }
 0x3cc   : > { %994 = vmax.xlane.f32.xlu0 %v3174_v27 }
 0x3ce   : > { %996 = vmax.xlane.f32.xlu1 %v3179_v29 }
 0x3cf   : > { %v3186_v31 = vpop.f32.mrb[12].mxu1 }
 0x3d0   : > { %v3188_v32 = vpop.f32.mrb[13].mxu1 }
 0x3d1   : > { %v3190_v33 = vpop.f32.mrb[14].mxu1  ;;  %998 = vmax.xlane.f32.xlu0 %v3188_v32 }
 0x3d2   : > { %992 = vmax.xlane.f32.xlu1 %v3182_v30  ;;  %v3194_v34 = vpop.f32.mrb[15].mxu1 }
 0x3d5   : > { %1002 = vmax.xlane.f32.xlu0 %v3186_v31 }
 0x3d6   : > { %1004 = vmax.xlane.f32.xlu1 %v3190_v33 }
 0x3da   : > { %1000 = vmax.xlane.f32.xlu1 %v3194_v34 }
 0x445   : > { %v979_v36 = vpop.xlane.xlu0 %978 }
 0x446   : > { %v3204_v38 = vmax.f32 %v3199_v35, %v979_v36 }
 0x447   : > { %v981_v39 = vpop.xlane.xlu1 %980 }
 0x448   : > { %1546 = vst.msk [vmem:[#allocation3 + $0x10] sm:$0xff] %vm1278_vm1, %v3204_v38  ;;  %v3209_v41 = vmax.f32 %v3201_v37, %v981_v39  ;;  %1082 = vperm.xlu1 %2300, %v3204_v38  }
 0x449   : > { %v975_v42 = vpop.xlane.xlu0 %974 }
 0x44a   : > { %1547 = vst.msk [vmem:[#allocation3 + $0x18] sm:$0xff] %vm1278_vm1, %v3209_v41  ;;  %v1006_v43 = vmax.f32 %v958_v40, %v975_v42  ;;  %v1025_v58 = vsub.f32 %v3201_v37, %v3209_v41 }
 0x44c   : > { %1544 = vst.msk [vmem:[#allocation3] sm:$0xff] %vm1278_vm1, %v1006_v43  ;;  %1072 = vperm.xlu0 %2301, %v1006_v43   ;;  %1087 = vperm.xlu1 %2300, %v3209_v41   ;;  %v1022_v10 = vsub.f32 %v958_v40, %v1006_v43  ;;  %v971_v40 = vld [vmem:[#allocation3 + $0x68] sm:$0xff]  ;;  %v1044_v41 = vmul.f32 1.442695, %v1025_v58 }
 0x44d   : > { %v977_v45 = vpop.xlane.xlu0 %976 }
 0x44e   : > { %v3221_v47 = vmax.f32 %v3214_v44, %v977_v45  ;;  %v1038_v60 = vmul.f32 1.442695, %v1022_v10 }
 0x44f   : > { %v989_v48 = vpop.xlane.xlu1 %988 }
 0x450   : > { %1545 = vst.msk [vmem:[#allocation3 + $0x8] sm:$0xff] %vm1278_vm1, %v3221_v47  ;;  %v3228_v50 = vmax.f32 %v3218_v46, %v989_v48  ;;  %1077 = vperm.xlu1 %2300, %v3221_v47   ;;  %v1023_v36 = vsub.f32 %v3214_v44, %v3221_v47  ;;  %2326 = vpow2.f32 %v1038_v60  ;;  %v1024_v44 = vsub.f32 %v3199_v35, %v3204_v38 }
 0x451   : > { %v987_v51 = vpop.xlane.xlu0 %986  ;;  %2328 = vpow2.f32 %v1044_v41 }
 0x452   : > { %1551 = vst.msk [vmem:[#allocation3 + $0x38] sm:$0xff] %vm1278_vm1, %v3228_v50  ;;  %v3236_v53 = vmax.f32 %v3223_v49, %v987_v51  ;;  %v1040_v47 = vmul.f32 1.442695, %v1023_v36  ;;  %v1029_v48 = vsub.f32 %v3218_v46, %v3228_v50 }
 0x453   : > { %v985_v54 = vpop.xlane.xlu1 %984 }
 0x454   : > { %1550 = vst.msk [vmem:[#allocation3 + $0x30] sm:$0xff] %vm1278_vm1, %v3236_v53  ;;  %v1011_v56 = vmax.f32 %v3231_v52, %v985_v54  ;;  %v1042_v54 = vmul.f32 1.442695, %v1024_v44  ;;  %2330 = vpow2.f32 %v1040_v47  ;;  %v1028_v46 = vsub.f32 %v3223_v49, %v3236_v53 }
 0x455   : > { %v983_v57 = vpop.xlane.xlu0 %982 }
 0x456   : > { %1549 = vst.msk [vmem:[#allocation3 + $0x28] sm:$0xff] %vm1278_vm1, %v1011_v56  ;;  %v3247_v61 = vmax.f32 %v3238_v55, %v983_v57  ;;  %1097 = vperm.xlu0 %2301, %v1011_v56   ;;  %v1027_v42 = vsub.f32 %v3231_v52, %v1011_v56  ;;  %v1052_v56 = vmul.f32 1.442695, %v1029_v48 }
 0x457   : > { %v991_v62 = vpop.xlane.xlu1 %990 }
 0x458   : > { %1548 = vst.msk [vmem:[#allocation3 + $0x20] sm:$0xff] %vm1278_vm1, %v3247_v61  ;;  %v3254_v0 = vmax.f32 %v3243_v59, %v991_v62  ;;  %1092 = vperm.xlu1 %2300, %v3247_v61   ;;  %v1048_v51 = vmul.f32 1.442695, %v1027_v42  ;;  %v1026_v52 = vsub.f32 %v3238_v55, %v3247_v61  ;;  %v1050_v62 = vmul.f32 1.442695, %v1028_v46 }
 0x459   : > { %v995_v1 = vpop.xlane.xlu0 %994 }
 0x45a   : > { %1552 = vst.msk [vmem:[#allocation3 + $0x40] sm:$0xff] %vm1278_vm1, %v3254_v0  ;;  %v3260_v3 = vmax.f32 %v3249_v63, %v995_v1  ;;  %1107 = vperm.xlu0 %2301, %v3228_v50   ;;  %2332 = vpow2.f32 %v1048_v51  ;;  %v3312_v38 = vpop.eup %2326  ;;  %v1046_v50 = vmul.f32 1.442695, %v1026_v52 }
 0x45b   : > { %v997_v4 = vpop.xlane.xlu1 %996  ;;  %2334 = vpow2.f32 %v1042_v54  ;;  %v3319_v61 = vpop.eup %2328 }
 0x45c   : > { %1554 = vst.msk [vmem:[#allocation3 + $0x50] sm:$0xff] %vm1278_vm1, %v3260_v3  ;;  %v1017_v6 = vmax.f32 %v969_v2, %v997_v4  ;;  %1122 = vperm.xlu1 %2300, %v3260_v3   ;;  %2336 = vpow2.f32 %v1052_v56  ;;  %v1032_v1 = vsub.f32 %v3249_v63, %v3260_v3 }
 0x45d   : > { %2338 = vpow2.f32 %v1046_v50 }
 0x45e   : > { %1555 = vst.msk [vmem:[#allocation3 + $0x58] sm:$0xff] %vm1278_vm1, %v1017_v6  ;;  %v999_v9 = vpop.xlane.xlu0 %998  ;;  %v1033_v35 = vsub.f32 %v969_v2, %v1017_v6  ;;  %v3324_v2 = vpop.eup %2330 }
 0x45f   : > { %v993_v11 = vpop.xlane.xlu1 %992  ;;  %v3272_v12 = vmax.f32 %v3266_v7, %v999_v9 }
 0x460   : > { %v1015_v13 = vmax.f32 %v3268_v8, %v993_v11  ;;  %1112 = vperm.xlu1 %2300, %v3254_v0   ;;  %v1060_v57 = vmul.f32 1.442695, %v1033_v35 }
 0x461   : > { %1556 = vst.msk [vmem:[#allocation3 + $0x60] sm:$0xff] %vm1278_vm1, %v3272_v12  ;;  %v1034_v11 = vsub.f32 %v3266_v7, %v3272_v12 }
 0x462   : > { %1553 = vst.msk [vmem:[#allocation3 + $0x48] sm:$0xff] %vm1278_vm1, %v1015_v13  ;;  %v1003_v17 = vpop.xlane.xlu0 %1002  ;;  %v1031_v55 = vsub.f32 %v3268_v8, %v1015_v13  ;;  %2340 = vpow2.f32 %v1060_v57  ;;  %v1058_v8 = vmul.f32 1.442695, %v1032_v1 }
 0x463   : > { %v1005_v18 = vpop.xlane.xlu1 %1004  ;;  %v3286_v5 = vmax.f32 %v3276_v14, %v1003_v17  ;;  %2342 = vpow2.f32 %v1050_v62 }
 0x464   : > { %v3289_v15 = vmax.f32 %v3280_v16, %v1005_v18  ;;  %1127 = vperm.xlu1 %2300, %v1017_v6   ;;  %v1056_v49 = vmul.f32 1.442695, %v1031_v55  ;;  %v3327_v4 = vpop.eup %2332  ;;  %v1030_v6 = vsub.f32 %v3243_v59, %v3254_v0  ;;  %v1062_v0 = vmul.f32 1.442695, %v1034_v11 }
 0x465   : > { %v1036_v39 = vsub.f32 %v3276_v14, %v3286_v5  ;;  %1558 = vst.msk [vmem:[#allocation3 + $0x70] sm:$0xff] %vm1278_vm1, %v3286_v5  ;;  %v3332_v9 = vpop.eup %2334 }
 0x466   : > { %v1037_v37 = vsub.f32 %v3280_v16, %v3289_v15  ;;  %1559 = vst.msk [vmem:[#allocation3 + $0x78] sm:$0xff] %vm1278_vm1, %v3289_v15  ;;  %2344 = vpow2.f32 %v1056_v49  ;;  %v3335_v3 = vpop.eup %2336  ;;  %v1054_v10 = vmul.f32 1.442695, %v1030_v6 }
 0x467   : > { %v1001_v43 = vpop.xlane.xlu1 %1000  ;;  %2346 = vpow2.f32 %v1058_v8 }
 0x468   : > { %v1019_v45 = vmax.f32 %v971_v40, %v1001_v43  ;;  %1117 = vperm.xlu1 %2300, %v1015_v13   ;;  %v3340_v13 = vpop.eup %2338 }
 0x46a   : > { %1557 = vst.msk [vmem:[#allocation3 + $0x68] sm:$0xff] %vm1278_vm1, %v1019_v45  ;;  %1137 = vperm.xlu0 %2301, %v1019_v45  }
 0x46c   : > { %1102 = vperm.xlu1 %2300, %v3236_v53   ;;  %v1035_v53 = vsub.f32 %v971_v40, %v1019_v45  ;;  %v3343_v59 = vpop.eup %2340 }
 0x46d   : > { %v3346_v17 = vpop.eup %2342 }
 0x46e   : > { %1147 = vperm.xlu0 %2301, %v3289_v15   ;;  %v1064_v63 = vmul.f32 1.442695, %v1035_v53 }
 0x470   : > { %1132 = vperm.xlu1 %2300, %v3272_v12   ;;  %2348 = vpow2.f32 %v1064_v63  ;;  %v3349_v58 = vpop.eup %2344 }
 0x471   : > { %2350 = vpow2.f32 %v1054_v10  ;;  %v3352_v7 = vpop.eup %2346 }
 0x472   : > { %1313 = vperm.xlu0 %2301, %v3312_v38   ;;  %2352 = vpow2.f32 %v1062_v0 }
 0x474   : > { %1142 = vperm.xlu1 %2300, %v3286_v5  }
 0x476   : > { %1328 = vperm.xlu0 %2301, %v3319_v61  }
 0x478   : > { %1318 = vperm.xlu1 %2300, %v3324_v2  }
 0x47a   : > { %1338 = vperm.xlu0 %2301, %v3327_v4   ;;  %v3355_v12 = vpop.eup %2348 }
 0x47b   : > { %v3358_v60 = vpop.eup %2350 }
 0x47c   : > { %1323 = vperm.xlu1 %2300, %v3332_v9   ;;  %v3361_v18 = vpop.eup %2352 }
 0x47e   : > { %1348 = vperm.xlu0 %2301, %v3335_v3  }
 0x480   : > { %1333 = vperm.xlu1 %2300, %v3340_v13  }
 0x482   : > { %1368 = vperm.xlu0 %2301, %v3343_v59  }
 0x484   : > { %1343 = vperm.xlu1 %2300, %v3346_v17  }
 0x486   : > { %1358 = vperm.xlu0 %2301, %v3349_v58  }
 0x488   : > { %1363 = vperm.xlu1 %2300, %v3352_v7  }
 0x48a   : > { %1378 = vperm.xlu0 %2301, %v3355_v12  }
 0x48c   : > { %1353 = vperm.xlu1 %2300, %v3358_v60  }
 0x490   : > { %1373 = vperm.xlu1 %2300, %v3361_v18  }
 0x4c7   : > { %v1083_v36 = vpop.permute.xlu1 %1082 }
 0x4c8   : > { %v1152_v40 = vsub.f32 %v3151_v19, %v1083_v36 }
 0x4ca   : > { %v1170_v41 = vmul.f32 1.442695, %v1152_v40 }
 0x4cb   : > { %v1073_v42 = vpop.permute.xlu0 %1072  ;;  %v1088_v43 = vpop.permute.xlu1 %1087 }
 0x4cc   : > { %2354 = vpow2.f32 %v1170_v41  ;;  %v1150_v45 = vsub.f32 %v3154_v20, %v1073_v42  ;;  %v1153_v44 = vsub.f32 %v3156_v21, %v1088_v43 }
 0x4ce   : > { %v1166_v47 = vmul.f32 1.442695, %v1150_v45  ;;  %v1172_v48 = vmul.f32 1.442695, %v1153_v44 }
 0x4cf   : > { %v1078_v51 = vpop.permute.xlu1 %1077 }
 0x4d0   : > { %2356 = vpow2.f32 %v1166_v47  ;;  %v1151_v54 = vsub.f32 %v3159_v22, %v1078_v51 }
 0x4d1   : > { %2358 = vpow2.f32 %v1172_v48 }
 0x4d2   : > { %v1168_v52 = vmul.f32 1.442695, %v1151_v54 }
 0x4d4   : > { %2360 = vpow2.f32 %v1168_v52 }
 0x4d5   : > { %v1098_v56 = vpop.permute.xlu0 %1097 }
 0x4d6   : > { %v2355_v35 = vpop.eup %2354  ;;  %v1155_v19 = vsub.f32 %v3170_v26, %v1098_v56 }
 0x4d7   : > { %1234 = vadd.xlane.f32.xlu0 %v2355_v35  ;;  %v1093_v46 = vpop.permute.xlu1 %1092 }
 0x4d8   : > { %v1176_v50 = vmul.f32 1.442695, %v1155_v19  ;;  %v1154_v20 = vsub.f32 %v3165_v24, %v1093_v46 }
 0x4d9   : > { %v1108_v57 = vpop.permute.xlu0 %1107 }
 0x4da   : > { %v2357_v21 = vpop.eup %2356  ;;  %v1174_v55 = vmul.f32 1.442695, %v1154_v20  ;;  %v1157_v62 = vsub.f32 %v3167_v25, %v1108_v57  ;;  %2362 = vpow2.f32 %v1176_v50 }
 0x4db   : > { %v2359_v1 = vpop.eup %2358  ;;  %1230 = vadd.xlane.f32.xlu1 %v2357_v21  ;;  %v1123_v22 = vpop.permute.xlu1 %1122 }
 0x4dc   : > { %2364 = vpow2.f32 %v1174_v55  ;;  %v1180_v49 = vmul.f32 1.442695, %v1157_v62  ;;  %v1408_v53 = vpack.c.bf16 %v2359_v1, %v2355_v35  ;;  %v1160_v26 = vsub.f32 %v3174_v27, %v1123_v22 }
 0x4de   : > { %v2361_v6 = vpop.eup %2360  ;;  %2366 = vpow2.f32 %v1180_v49  ;;  %v1186_v63 = vmul.f32 1.442695, %v1160_v26  ;;  %v1066_v26 = vmul.f32 1.442695, %v1036_v39 }
 0x4df   : > { %1236 = vadd.xlane.f32.xlu1 %v2359_v1  ;;  %1232 = vadd.xlane.f32.xlu0 %v2361_v6  ;;  %v1113_v8 = vpop.permute.xlu1 %1112  ;;  %v1407_v24 = vpack.c.bf16 %v2361_v6, %v2357_v21 }
 0x4e0   : > { %v1158_v25 = vsub.f32 %v3177_v28, %v1113_v8  ;;  %2368 = vpow2.f32 %v1186_v63  ;;  %v1068_v63 = vmul.f32 1.442695, %v1037_v37 }
 0x4e1   : > { %2100 = vmatprep.mubr.bf16.mxu0 %v1407_v24 }
 0x4e2   : > { %2101 = vmatmul.mubr.bf16.vlgmr.msra.gmra.mrb[32].mxu0 %v1408_v53  ;;  %v1182_v41 = vmul.f32 1.442695, %v1158_v25 }
 0x4e3   : > { %v1128_v10 = vpop.permute.xlu1 %1127 }
 0x4e4   : > { %v1161_v11 = vsub.f32 %v3179_v29, %v1128_v10  ;;  %v2363_v0 = vpop.eup %2362 }
 0x4e6   : > { %v2365_v36 = vpop.eup %2364  ;;  %v1188_v40 = vmul.f32 1.442695, %v1161_v11 }
 0x4e7   : > { %v1118_v42 = vpop.permute.xlu1 %1117  ;;  %v1409_v43 = vpack.c.bf16 %v2363_v0, %v2365_v36 }
 0x4e8   : > { %v2367_v27 = vpop.eup %2366  ;;  %2370 = vpow2.f32 %v1188_v40  ;;  %v1159_v45 = vsub.f32 %v3182_v30, %v1118_v42 }
 0x4e9   : > { %v1138_v44 = vpop.permute.xlu0 %1137  ;;  %1244 = vadd.xlane.f32.xlu1 %v2367_v27  ;;  %2104 = vmatprep.mubr.bf16.mxu0 %v1409_v43  ;;  %2372 = vpow2.f32 %v1182_v41  ;;  %v1200_v43 = vld [vmem:[#allocation4 + $0x10] sm:$0xff] }
 0x4ea   : > { %v1184_v47 = vmul.f32 1.442695, %v1159_v45  ;;  %v1163_v28 = vsub.f32 %v3194_v34, %v1138_v44  ;;  %v2369_v46 = vpop.eup %2368 }
 0x4eb   : > { %v1103_v48 = vpop.permute.xlu1 %1102 }
 0x4ec   : > { %2374 = vpow2.f32 %v1184_v47  ;;  %v1156_v29 = vsub.f32 %v3162_v23, %v1103_v48  ;;  %v1192_v56 = vmul.f32 1.442695, %v1163_v28  ;;  %v1198_v47 = vld [vmem:[#allocation4] sm:$0xff] }
 0x4ed   : > { %v1148_v51 = vpop.permute.xlu0 %1147  ;;  %1240 = vadd.xlane.f32.xlu1 %v2363_v0  ;;  %v1214_v48 = vmul.f32 %v3312_v38, %v1198_v47 }
 0x4ee   : > { %v1178_v54 = vmul.f32 1.442695, %v1156_v29  ;;  %v1165_v52 = vsub.f32 %v3190_v33, %v1148_v51  ;;  %v1199_v51 = vld [vmem:[#allocation4 + $0x8] sm:$0xff] }
 0x4ef   : > { %v1133_v35 = vpop.permute.xlu1 %1132 }
 0x4f0   : > { %2376 = vpow2.f32 %v1178_v54  ;;  %v1196_v30 = vmul.f32 1.442695, %v1165_v52  ;;  %v1162_v19 = vsub.f32 %v3188_v32, %v1133_v35  ;;  %v1201_v54 = vld [vmem:[#allocation4 + $0x18] sm:$0xff] }
 0x4f1   : > { %v3389_v14 = vpop.permute.xlu0 %1313  ;;  %v1217_v35 = vmul.f32 %v3319_v61, %v1201_v54 }
 0x4f2   : > { %v2371_v50 = vpop.eup %2370  ;;  %2378 = vpow2.f32 %v1196_v30  ;;  %v1190_v20 = vmul.f32 1.442695, %v1162_v19 }
 0x4f3   : > { %2380 = vpow2.f32 %v1192_v56  ;;  %1252 = vadd.xlane.f32.xlu1 %v2371_v50  ;;  %v1143_v34 = vpop.permute.xlu1 %1142  ;;  %v1412_v57 = vpack.c.bf16 %v2371_v50, %v2369_v46  ;;  %v2373_v21 = vpop.eup %2372  ;;  %v1215_v56 = vmul.f32 %v3324_v2, %v1199_v51  ;;  %v1205_v50 = vld [vmem:[#allocation4 + $0x38] sm:$0xff]  ;;  %v1206_v51 = vld [vmem:[#allocation4 + $0x40] sm:$0xff] }
 0x4f4   : > { %2382 = vpow2.f32 %v1190_v20  ;;  %v1164_v23 = vsub.f32 %v3186_v31, %v1143_v34  ;;  %v1221_v38 = vmul.f32 %v3335_v3, %v1205_v50  ;;  %v1203_v34 = vld [vmem:[#allocation4 + $0x28] sm:$0xff] }
 0x4f5   : > { %v3393_v39 = vpop.permute.xlu0 %1328  ;;  %v1219_v2 = vmul.f32 %v3327_v4, %v1203_v34  ;;  %v1296_v34 = vld [vmem:[#allocation5 + $0x8] sm:$0xff] }
 0x4f6   : > { %v2375_v55 = vpop.eup %2374  ;;  %v1194_v33 = vmul.f32 1.442695, %v1164_v23 }
 0x4f7   : > { %1248 = vadd.xlane.f32.xlu1 %v2375_v55  ;;  %v1411_v62 = vpack.c.bf16 %v2375_v55, %v2373_v21  ;;  %v3391_v5 = vpop.permute.xlu1 %1318 }
 0x4f8   : > { %2384 = vpow2.f32 %v1194_v33 }
 0x4f9   : > { %2108 = vmatprep.mubr.bf16.mxu1 %v1411_v62  ;;  %2386 = vpow2.f32 %v1066_v26  ;;  %v3397_v11 = vpop.permute.xlu0 %1338  ;;  %v1207_v62 = vld [vmem:[#allocation4 + $0x48] sm:$0xff] }
 0x4fa   : > { %v2377_v1 = vpop.eup %2376  ;;  %2109 = vmatmul.mubr.bf16.vlgmr.msra.gmra.mrb[16].mxu1 %v1412_v57  ;;  %2388 = vpow2.f32 %v1068_v63  ;;  %v1223_v3 = vmul.f32 %v3349_v58, %v1207_v62  ;;  %v1211_v63 = vld [vmem:[#allocation4 + $0x68] sm:$0xff] }
 0x4fb   : > { %1242 = vadd.xlane.f32.xlu0 %v2377_v1  ;;  %v1410_v32 = vpack.c.bf16 %v2367_v27, %v2377_v1  ;;  %v3395_v10 = vpop.permute.xlu1 %1323  ;;  %v1216_v27 = vmul.f32 %v3332_v9, %v1200_v43 }
 0x4fc   : > { %v2379_v22 = vpop.eup %2378 }
 0x4fd   : > { %v2381_v49 = vpop.eup %2380  ;;  %1260 = vadd.xlane.f32.xlu1 %v2379_v22  ;;  %2105 = vmatmul.mubr.bf16.gmra.mrb[36].mxu0 %v1410_v32 }
 0x4fe   : > { %v2383_v53 = vpop.eup %2382 }
 0x4ff   : > { %1238 = vadd.xlane.f32.xlu0 %v2365_v36  ;;  %v1413_v6 = vpack.c.bf16 %v2381_v49, %v2383_v53  ;;  %v3399_v0 = vpop.permute.xlu1 %1333  ;;  %v3401_v36 = vpop.permute.xlu0 %1348 }
 0x501   : > { %1256 = vadd.xlane.f32.xlu1 %v2381_v49  ;;  %2112 = vmatprep.mubr.bf16.mxu1 %v1413_v6 }
 0x502   : > { %v2385_v31 = vpop.eup %2384 }
 0x503   : > { %1250 = vadd.xlane.f32.xlu0 %v2369_v46  ;;  %v1414_v8 = vpack.c.bf16 %v2379_v22, %v2385_v31  ;;  %v3383_v24 = vpop.eup %2386  ;;  %v3403_v40 = vpop.permute.xlu1 %1343  ;;  %v1204_v22 = vld [vmem:[#allocation4 + $0x30] sm:$0xff] }
 0x504   : > { %v2389_v25 = vpop.eup %2388  ;;  %v3405_v16 = vpop.permute.xlu0 %1368  ;;  %v1220_v4 = vmul.f32 %v3346_v17, %v1204_v22  ;;  %v1306_v22 = vld [vmem:[#allocation5 + $0x58] sm:$0xff] }
 0x505   : > { %2113 = vmatmul.mubr.bf16.gmra.mrb[20].mxu1 %v1414_v8 }
 0x507   : > { %1246 = vadd.xlane.f32.xlu0 %v2373_v21  ;;  %v3407_v15 = vpop.permute.xlu1 %1363  ;;  %v1209_v21 = vld [vmem:[#allocation4 + $0x58] sm:$0xff] }
 0x508   : > { %v3409_v37 = vpop.permute.xlu0 %1358  ;;  %v1225_v55 = vmul.f32 %v3343_v59, %v1209_v21 }
 0x50b   : > { %1258 = vadd.xlane.f32.xlu0 %v2385_v31  ;;  %v3411_v41 = vpop.permute.xlu1 %1353  ;;  %v1202_v31 = vld [vmem:[#allocation4 + $0x20] sm:$0xff] }
 0x50c   : > { %v3413_v42 = vpop.permute.xlu0 %1378 }
 0x50f   : > { %1254 = vadd.xlane.f32.xlu0 %v2383_v53  ;;  %v3416_v45 = vpop.permute.xlu1 %1373  ;;  %v1213_v53 = vld [vmem:[#allocation4 + $0x78] sm:$0xff] }
 0x510   : > { %v1229_v8 = vmul.f32 %v2389_v25, %v1213_v53  ;;  %v1299_v53 = vld [vmem:[#allocation5 + $0x20] sm:$0xff] }
 0x512   : > { %1383 = vperm.xlu1 %2300, %v3383_v24  }
 0x525   : > { %1388 = vperm.xlu0 %2301, %v2389_v25  }
 0x564   : > { %v1235_v44 = vpop.xlane.xlu0 %1234 }
 0x565   : > { %v1264_v28 = vadd.f32 %v1235_v44, %v1216_v27  ;;  %v1218_v27 = vmul.f32 %v3340_v13, %v1202_v31  ;;  %v1208_v44 = vld [vmem:[#allocation4 + $0x50] sm:$0xff]  ;;  %v1222_v13 = vmul.f32 %v3358_v60, %v1206_v51  ;;  %v1295_v60 = vld [vmem:[#allocation5] sm:$0xff]  ;;  %v1402_v31 = vmul.f32 %v3405_v16, %v1306_v22 }
 0x566   : > { %v1224_v25 = vmul.f32 %v3352_v7, %v1208_v44  ;;  %v1395_v44 = vmul.f32 %v3399_v0, %v1299_v53  ;;  %v1309_v0 = vld [vmem:[#allocation5 + $0x70] sm:$0xff] }
 0x567   : > { %1281 = vst.msk [vmem:[#allocation4 + $0x10] sm:$0xff] %vm1278_vm1, %v1264_v28  ;;  %v1227_v28 = vmul.f32 %v3355_v12, %v1211_v63 }
 0x568   : > { %v1231_v29 = vpop.xlane.xlu1 %1230 }
 0x569   : > { %v1262_v52 = vadd.f32 %v1231_v29, %v1214_v48 }
 0x56b   : > { %1279 = vst.msk [vmem:[#allocation4] sm:$0xff] %vm1278_vm1, %v1262_v52 }
 0x56c   : > { %v1233_v9 = vpop.xlane.xlu0 %1232  ;;  %v1237_v30 = vpop.xlane.xlu1 %1236 }
 0x56d   : > { %v1263_v19 = vadd.f32 %v1233_v9, %v1215_v56  ;;  %v1265_v46 = vadd.f32 %v1237_v30, %v1217_v35  ;;  %v1212_v56 = vld [vmem:[#allocation4 + $0x70] sm:$0xff]  ;;  %v1210_v30 = vld [vmem:[#allocation4 + $0x60] sm:$0xff] }
 0x56e   : > { %v1228_v12 = vmul.f32 %v3383_v24, %v1212_v56  ;;  %v1226_v7 = vmul.f32 %v3361_v18, %v1210_v30 }
 0x56f   : > { %1280 = vst.msk [vmem:[#allocation4 + $0x8] sm:$0xff] %vm1278_vm1, %v1263_v19  ;;  %1282 = vst.msk [vmem:[#allocation4 + $0x18] sm:$0xff] %vm1278_vm1, %v1265_v46 }
 0x576   : > { %v1245_v20 = vpop.xlane.xlu1 %1244 }
 0x577   : > { %v1269_v57 = vadd.f32 %v1245_v20, %v1221_v38  ;;  %v1297_v38 = vld [vmem:[#allocation5 + $0x10] sm:$0xff]  ;;  %v1298_v20 = vld [vmem:[#allocation5 + $0x18] sm:$0xff] }
 0x579   : > { %1286 = vst.msk [vmem:[#allocation4 + $0x38] sm:$0xff] %vm1278_vm1, %v1269_v57  ;;  %v1393_v57 = vmul.f32 %v3395_v10, %v1297_v38  ;;  %v1303_v10 = vld [vmem:[#allocation5 + $0x40] sm:$0xff] }
 0x57a   : > { %v1241_v23 = vpop.xlane.xlu1 %1240 }
 0x57b   : > { %v1267_v61 = vadd.f32 %v1241_v23, %v1219_v2  ;;  %v1391_v2 = vmul.f32 %v3389_v14, %v1295_v60  ;;  %v1394_v23 = vmul.f32 %v3393_v39, %v1298_v20  ;;  %v1301_v14 = vld [vmem:[#allocation5 + $0x30] sm:$0xff] }
 0x57c   : > { %v1397_v63 = vmul.f32 %v3403_v40, %v1301_v14 }
 0x57d   : > { %1284 = vst.msk [vmem:[#allocation4 + $0x28] sm:$0xff] %vm1278_vm1, %v1267_v61 }
 0x580   : > { %v1253_v33 = vpop.xlane.xlu1 %1252 }
 0x581   : > { %v1273_v1 = vadd.f32 %v1253_v33, %v1225_v55  ;;  %v1392_v55 = vmul.f32 %v3391_v5, %v1296_v34 }
 0x583   : > { %1290 = vst.msk [vmem:[#allocation4 + $0x58] sm:$0xff] %vm1278_vm1, %v1273_v1 }
 0x584   : > { %v1249_v32 = vpop.xlane.xlu1 %1248 }
 0x585   : > { %v1271_v49 = vadd.f32 %v1249_v32, %v1223_v3  ;;  %v1305_v32 = vld [vmem:[#allocation5 + $0x50] sm:$0xff] }
 0x586   : > { %v1401_v39 = vmul.f32 %v3407_v15, %v1305_v32 }
 0x587   : > { %1288 = vst.msk [vmem:[#allocation4 + $0x48] sm:$0xff] %vm1278_vm1, %v1271_v49  ;;  %v1304_v49 = vld [vmem:[#allocation5 + $0x48] sm:$0xff] }
 0x588   : > { %v1243_v6 = vpop.xlane.xlu0 %1242 }
 0x589   : > { %v1268_v26 = vadd.f32 %v1243_v6, %v1220_v4  ;;  %v1399_v4 = vmul.f32 %v3411_v41, %v1303_v10  ;;  %v1302_v6 = vld [vmem:[#allocation5 + $0x38] sm:$0xff] }
 0x58a   : > { %v1261_v59 = vpop.xlane.xlu1 %1260  ;;  %v1398_v41 = vmul.f32 %v3401_v36, %v1302_v6  ;;  %v1310_v36 = vld [vmem:[#allocation5 + $0x78] sm:$0xff] }
 0x58b   : > { %1285 = vst.msk [vmem:[#allocation4 + $0x30] sm:$0xff] %vm1278_vm1, %v1268_v26  ;;  %v1277_v43 = vadd.f32 %v1261_v59, %v1229_v8  ;;  %v1300_v59 = vld [vmem:[#allocation5 + $0x28] sm:$0xff]  ;;  %v1575_v10 = vld [vmem:[#allocation4 + $0x58] sm:$0xff] (!%p1965_p7) }
 0x58c   : > { %v1239_v58 = vpop.xlane.xlu0 %1238 }
 0x58d   : > { %1294 = vst.msk [vmem:[#allocation4 + $0x78] sm:$0xff] %vm1278_vm1, %v1277_v43  ;;  %v1266_v47 = vadd.f32 %v1239_v58, %v1218_v27  ;;  %v1400_v43 = vmul.f32 %v3409_v37, %v1304_v49 }
 0x58e   : > { %v1257_v48 = vpop.xlane.xlu1 %1256 }
 0x58f   : > { %1283 = vst.msk [vmem:[#allocation4 + $0x20] sm:$0xff] %vm1278_vm1, %v1266_v47  ;;  %v1275_v17 = vadd.f32 %v1257_v48, %v1227_v28 }
 0x590   : > { %v1251_v29 = vpop.xlane.xlu0 %1250 }
 0x591   : > { %1292 = vst.msk [vmem:[#allocation4 + $0x68] sm:$0xff] %vm1278_vm1, %v1275_v17  ;;  %v1272_v54 = vadd.f32 %v1251_v29, %v1224_v25  ;;  %v1396_v25 = vmul.f32 %v3397_v11, %v1300_v59 }
 0x593   : > { %1289 = vst.msk [vmem:[#allocation4 + $0x50] sm:$0xff] %vm1278_vm1, %v1272_v54  ;;  %v1384_v54 = vpop.permute.xlu1 %1383 }
 0x594   : > { %v1247_v52 = vpop.xlane.xlu0 %1246  ;;  %v1579_v6 = vld [vmem:[#allocation4 + $0x78] sm:$0xff] (!%p1965_p7) }
 0x595   : > { %v1270_v35 = vadd.f32 %v1247_v52, %v1222_v13  ;;  %v1307_v52 = vld [vmem:[#allocation5 + $0x60] sm:$0xff] }
 0x596   : > { %v1403_v11 = vmul.f32 %v3416_v45, %v1307_v52  ;;  %v1564_v45 = vld [vmem:[#allocation4] sm:$0xff] (!%p1965_p7) }
 0x597   : > { %1287 = vst.msk [vmem:[#allocation4 + $0x40] sm:$0xff] %vm1278_vm1, %v1270_v35  ;;  %v1308_v35 = vld [vmem:[#allocation5 + $0x68] sm:$0xff] }
 0x598   : > { %v1259_v9 = vpop.xlane.xlu0 %1258 }
 0x599   : > { %v1276_v19 = vadd.f32 %v1259_v9, %v1228_v12  ;;  %v1405_v12 = vmul.f32 %v1384_v54, %v1309_v0 }
 0x59a   : > { %v1574_v14 = vld [vmem:[#allocation4 + $0x50] sm:$0xff] (!%p1965_p7) }
 0x59b   : > { %1293 = vst.msk [vmem:[#allocation4 + $0x70] sm:$0xff] %vm1278_vm1, %v1276_v19 }
 0x59c   : > { %v1255_v46 = vpop.xlane.xlu0 %1254 }
 0x59d   : > { %v1274_v50 = vadd.f32 %v1255_v46, %v1226_v7  ;;  %v1404_v46 = vmul.f32 %v3413_v42, %v1308_v35  ;;  %v1565_v42 = vld [vmem:[#allocation4 + $0x8] sm:$0xff] (!%p1965_p7)  ;;  %v1711_v35 = vld [vmem:[%s2984_s26 + $0x18] sm:$0xff] (!%p1965_p7) }
 0x59f   : > { %1291 = vst.msk [vmem:[#allocation4 + $0x60] sm:$0xff] %vm1278_vm1, %v1274_v50 }
 0x5a4   : > { %v1389_v56 = vpop.permute.xlu0 %1388 }
 0x5a5   : > { %v1406_v30 = vmul.f32 %v1389_v56, %v1310_v36 }
 0x5b5   : > { %v2102_v24 = vpop.f32.mrb[32].mxu0 }
 0x5b6   : > { %v1514_v61 = vadd.f32 %v2102_v24, %v1393_v57  ;;  %v1449_v21 = vpop.f32.mrb[33].mxu0  ;;  %v1566_v57 = vld [vmem:[#allocation4 + $0x10] sm:$0xff] (!%p1965_p7)  ;;  %v2670_v24 = vmov (!%p1965_p7), 0  }
 0x5b7   : > { %v1512_v18 = vadd.f32 %v1449_v21, %v1391_v2  ;;  %v2103_v33 = vpop.f32.mrb[34].mxu0  ;;  %v1567_v2 = vld [vmem:[#allocation4 + $0x18] sm:$0xff] (!%p1965_p7)  ;;  %2391 = vset.pattern.permute.xlu1 (!%p1965_p7), %v2670_v24  ;;  %2390 = vset.pattern.permute.xlu0 (!%p1965_p7), %v2670_v24  ;;  %2392 = vrcp.f32 (!%p1965_p7), %v1566_v57  ;;  %v1712_v24 = vld [vmem:[%s2984_s26 + $0x20] sm:$0xff] (!%p1965_p7) }
 0x5b8   : > { %1530 = vst [vmem:[#allocation5 + $0x10] sm:$0xff] %v1514_v61  ;;  %v1515_v62 = vadd.f32 %v2103_v33, %v1394_v23  ;;  %v1452_v1 = vpop.f32.mrb[35].mxu0  ;;  %2394 = vrcp.f32 (!%p1965_p7), %v1564_v45  ;;  %v1569_v23 = vld [vmem:[#allocation4 + $0x28] sm:$0xff] (!%p1965_p7)  ;;  %v1568_v61 = vld [vmem:[#allocation4 + $0x20] sm:$0xff] (!%p1965_p7)  ;;  %v1571_v21 = vld [vmem:[#allocation4 + $0x38] sm:$0xff] (!%p1965_p7) }
 0x5b9   : > { %1528 = vst [vmem:[#allocation5] sm:$0xff] %v1512_v18  ;;  %v1513_v3 = vadd.f32 %v1452_v1, %v1392_v55  ;;  %2396 = vrcp.f32 (!%p1965_p7), %v1567_v2  ;;  %v1570_v55 = vld [vmem:[#allocation4 + $0x30] sm:$0xff] (!%p1965_p7) }
 0x5ba   : > { %1531 = vst [vmem:[#allocation5 + $0x18] sm:$0xff] %v1515_v62  ;;  %2398 = vrcp.f32 (!%p1965_p7), %v1565_v42  ;;  %v1573_v62 = vld [vmem:[#allocation4 + $0x48] sm:$0xff] (!%p1965_p7) }
 0x5bb   : > { %1529 = vst [vmem:[#allocation5 + $0x8] sm:$0xff] %v1513_v3  ;;  %2400 = vrcp.f32 (!%p1965_p7), %v1569_v23  ;;  %v1572_v3 = vld [vmem:[#allocation4 + $0x40] sm:$0xff] (!%p1965_p7) }
 0x5bc   : > { %2402 = vrcp.f32 (!%p1965_p7), %v1568_v61 }
 0x5bd   : > { %2404 = vrcp.f32 (!%p1965_p7), %v1571_v21 }
 0x5be   : > { %2406 = vrcp.f32 (!%p1965_p7), %v1570_v55 }
 0x5bf   : > { %2408 = vrcp.f32 (!%p1965_p7), %v1573_v62  ;;  %v1715_v62 = vld [vmem:[%s2984_s26 + $0x38] sm:$0xff] (!%p1965_p7) }
 0x5c0   : > { %2410 = vrcp.f32 (!%p1965_p7), %v1572_v3 }
 0x5c1   : > { %v2393_v18 = vpop.eup (!%p1965_p7), %2392  ;;  %2412 = vrcp.f32 (!%p1965_p7), %v1575_v10  ;;  %v1714_v10 = vld [vmem:[%s2984_s26 + $0x30] sm:$0xff] (!%p1965_p7) }
 0x5c2   : > { %v2395_v33 = vpop.eup (!%p1965_p7), %2394  ;;  %1624 = vperm.xlu1 (!%p1965_p7), %2391, %v2393_v18   ;;  %2414 = vrcp.f32 (!%p1965_p7), %v1574_v14 }
 0x5c3   : > { %v2397_v1 = vpop.eup (!%p1965_p7), %2396  ;;  %1614 = vperm.xlu0 (!%p1965_p7), %2390, %v2395_v33  }
 0x5c4   : > { %v2399_v32 = vpop.eup (!%p1965_p7), %2398 }
 0x5c5   : > { %v2401_v22 = vpop.eup (!%p1965_p7), %2400 }
 0x5c6   : > { %1629 = vperm.xlu1 (!%p1965_p7), %2391, %v2397_v1   ;;  %v2403_v49 = vpop.eup (!%p1965_p7), %2402 }
 0x5c7   : > { %1619 = vperm.xlu0 (!%p1965_p7), %2390, %v2399_v32   ;;  %v2405_v53 = vpop.eup (!%p1965_p7), %2404 }
 0x5ca   : > { %1639 = vperm.xlu1 (!%p1965_p7), %2391, %v2401_v22  }
 0x5cb   : > { %1634 = vperm.xlu0 (!%p1965_p7), %2390, %v2403_v49  }
 0x5cd   : > { %v2110_v5 = vpop.f32.mrb[16].mxu1 }
 0x5ce   : > { %v1522_v26 = vadd.f32 %v2110_v5, %v1401_v39  ;;  %v1481_v8 = vpop.f32.mrb[17].mxu1  ;;  %v1577_v39 = vld [vmem:[#allocation4 + $0x68] sm:$0xff] (!%p1965_p7)  ;;  %v2407_v5 = vpop.eup (!%p1965_p7), %2406  ;;  %1649 = vperm.xlu1 (!%p1965_p7), %2391, %v2405_v53  }
 0x5cf   : > { %v1520_v27 = vadd.f32 %v1481_v8, %v1399_v4  ;;  %v2111_v58 = vpop.f32.mrb[18].mxu1  ;;  %v1576_v4 = vld [vmem:[#allocation4 + $0x60] sm:$0xff] (!%p1965_p7)  ;;  %2416 = vrcp.f32 (!%p1965_p7), %v1577_v39  ;;  %1644 = vperm.xlu0 (!%p1965_p7), %2390, %v2407_v5  }
 0x5d0   : > { %1538 = vst [vmem:[#allocation5 + $0x50] sm:$0xff] %v1522_v26  ;;  %v1523_v15 = vadd.f32 %v2111_v58, %v1402_v31  ;;  %v2106_v47 = vpop.f32.mrb[36].mxu0  ;;  %v1484_v28 = vpop.f32.mrb[19].mxu1  ;;  %2418 = vrcp.f32 (!%p1965_p7), %v1576_v4  ;;  %v1578_v26 = vld [vmem:[#allocation4 + $0x70] sm:$0xff] (!%p1965_p7) }
 0x5d1   : > { %1536 = vst [vmem:[#allocation5 + $0x40] sm:$0xff] %v1520_v27  ;;  %v1518_v48 = vadd.f32 %v2106_v47, %v1397_v63  ;;  %v1521_v16 = vadd.f32 %v1484_v28, %v1400_v43  ;;  %v1465_v17 = vpop.f32.mrb[37].mxu0  ;;  %v2409_v31 = vpop.eup (!%p1965_p7), %2408  ;;  %2420 = vrcp.f32 (!%p1965_p7), %v1579_v6  ;;  %v1596_v47 = vld [vmem:[#allocation5] sm:$0xff] (!%p1965_p7)  ;;  %v3463_v28 = vstv (!%p1965_p7), %s1724_s18  ;;  %v1717_v6 = vld [vmem:[%s2984_s26 + $0x48] sm:$0xff] (!%p1965_p7) }
 0x5d2   : > { %1539 = vst [vmem:[#allocation5 + $0x58] sm:$0xff] %v1523_v15  ;;  %v1516_v40 = vadd.f32 %v1465_v17, %v1395_v44  ;;  %v2107_v29 = vpop.f32.mrb[38].mxu0  ;;  %v2411_v8 = vpop.eup (!%p1965_p7), %2410  ;;  %1659 = vperm.xlu1 (!%p1965_p7), %2391, %v2409_v31   ;;  %2422 = vrcp.f32 (!%p1965_p7), %v1578_v26  ;;  %v1598_v15 = vld [vmem:[#allocation5 + $0x10] sm:$0xff] (!%p1965_p7) }
 0x5d3   : > { %1534 = vst [vmem:[#allocation5 + $0x30] sm:$0xff] %v1518_v48  ;;  %1537 = vst [vmem:[#allocation5 + $0x48] sm:$0xff] %v1521_v16  ;;  %v1519_v37 = vadd.f32 %v2107_v29, %v1398_v41  ;;  %v1468_v51 = vpop.f32.mrb[39].mxu0  ;;  %v2413_v59 = vpop.eup (!%p1965_p7), %2412  ;;  %1654 = vperm.xlu0 (!%p1965_p7), %2390, %v2411_v8   ;;  %v1710_v17 = vld [vmem:[%s2984_s26 + $0x10] sm:$0xff] (!%p1965_p7) }
 0x5d4   : > { %1532 = vst [vmem:[#allocation5 + $0x20] sm:$0xff] %v1516_v40  ;;  %v1517_v13 = vadd.f32 %v1468_v51, %v1396_v25  ;;  %v2415_v63 = vpop.eup (!%p1965_p7), %2414  ;;  %v1599_v40 = vld [vmem:[#allocation5 + $0x18] sm:$0xff] (!%p1965_p7)  ;;  %v1597_v51 = vld [vmem:[#allocation5 + $0x8] sm:$0xff] (!%p1965_p7) }
 0x5d5   : > { %1535 = vst [vmem:[#allocation5 + $0x38] sm:$0xff] %v1519_v37  ;;  %v1708_v37 = vld [vmem:[%s2984_s26] sm:$0xff] (!%p1965_p7) }
 0x5d6   : > { %1533 = vst [vmem:[#allocation5 + $0x28] sm:$0xff] %v1517_v13  ;;  %1669 = vperm.xlu1 (!%p1965_p7), %2391, %v2413_v59   ;;  %v1716_v59 = vld [vmem:[%s2984_s26 + $0x40] sm:$0xff] (!%p1965_p7) }
 0x5d7   : > { %1664 = vperm.xlu0 (!%p1965_p7), %2390, %v2415_v63   ;;  %v1606_v63 = vld [vmem:[#allocation5 + $0x50] sm:$0xff] (!%p1965_p7) }
 0x5d8   : > { %v2114_v9 = vpop.f32.mrb[20].mxu1  ;;  %1563 = sbr.rel (%p1965_p7) target bundleno = 1638 (0x666), region = 60  ;;  %v1604_v22 = vld [vmem:[#allocation5 + $0x40] sm:$0xff] (!%p1965_p7) }
 0x5d9   : > { %v1526_v19 = vadd.f32 %v2114_v9, %v1405_v12  ;;  %v1497_v7 = vpop.f32.mrb[21].mxu1  ;;  %v2417_v43 = vpop.eup (!%p1965_p7), %2416  ;;  %v1607_v26 = vld [vmem:[#allocation5 + $0x58] sm:$0xff] (!%p1965_p7) }
 0x5da   : > { %v1524_v50 = vadd.f32 %v1497_v7, %v1403_v11  ;;  %v2115_v38 = vpop.f32.mrb[22].mxu1  ;;  %v2419_v27 = vpop.eup (!%p1965_p7), %2418  ;;  %1679 = vperm.xlu1 (!%p1965_p7), %2391, %v2417_v43   ;;  %v1602_v42 = vld [vmem:[#allocation5 + $0x30] sm:$0xff] (!%p1965_p7)  ;;  %v1605_v3 = vld [vmem:[#allocation5 + $0x48] sm:$0xff] (!%p1965_p7) }
 0x5db   : > { %1542 = vst [vmem:[#allocation5 + $0x70] sm:$0xff] %v1526_v19  ;;  %v1527_v60 = vadd.f32 %v2115_v38, %v1406_v30  ;;  %v1500_v20 = vpop.f32.mrb[23].mxu1  ;;  %v2421_v58 = vpop.eup (!%p1965_p7), %2420  ;;  %1674 = vperm.xlu0 (!%p1965_p7), %2390, %v2419_v27   ;;  %v1709_v30 = vld [vmem:[%s2984_s26 + $0x8] sm:$0xff] (!%p1965_p7)  ;;  %v1600_v19 = vld [vmem:[#allocation5 + $0x20] sm:$0xff] (!%p1965_p7) }
 0x5dc   : > { %1540 = vst [vmem:[#allocation5 + $0x60] sm:$0xff] %v1524_v50  ;;  %v1525_v34 = vadd.f32 %v1500_v20, %v1404_v46  ;;  %v2423_v44 = vpop.eup (!%p1965_p7), %2422  ;;  %v1603_v45 = vld [vmem:[#allocation5 + $0x38] sm:$0xff] (!%p1965_p7) }
 0x5dd   : > { %1543 = vst [vmem:[#allocation5 + $0x78] sm:$0xff] %v1527_v60  ;;  %v1601_v11 = vld [vmem:[#allocation5 + $0x28] sm:$0xff] (!%p1965_p7) }
 0x5de   : > { %1541 = vst [vmem:[#allocation5 + $0x68] sm:$0xff] %v1525_v34  ;;  %1689 = vperm.xlu1 (!%p1965_p7), %2391, %v2421_v58   ;;  %v1713_v34 = vld [vmem:[%s2984_s26 + $0x28] sm:$0xff] (!%p1965_p7) }
 0x5df   : > { %1684 = vperm.xlu0 %2390, %v2423_v44  }
 0x641   : > { %v1625_v41 = vpop.permute.xlu1 %1624 }
 0x642   : > { %v1694_v48 = vmul.f32 %v1625_v41, %v1598_v15  ;;  %v1615_v16 = vpop.permute.xlu0 %1614  ;;  %v1719_v41 = vld [vmem:[%s2984_s26 + $0x58] sm:$0xff] }
 0x643   : > { %v1692_v25 = vmul.f32 %v1615_v16, %v1596_v47  ;;  %v1609_v16 = vld [vmem:[#allocation5 + $0x68] sm:$0xff] }
 0x644   : > { %v1728_v29 = vmul.f32 %v3463_v28, %v1694_v48 }
 0x645   : > { %v1726_v0 = vmul.f32 %v3463_v28, %v1692_v25  ;;  %v1630_v54 = vpop.permute.xlu1 %1629  ;;  %v1718_v25 = vld [vmem:[%s2984_s26 + $0x50] sm:$0xff] }
 0x646   : > { %v1744_v13 = vadd.f32 %v1728_v29, %v1710_v17  ;;  %v1695_v52 = vmul.f32 %v1630_v54, %v1599_v40  ;;  %v1620_v36 = vpop.permute.xlu0 %1619  ;;  %v1608_v40 = vld [vmem:[#allocation5 + $0x60] sm:$0xff] }
 0x647   : > { %v1742_v56 = vadd.f32 %v1726_v0, %v1708_v37  ;;  %v1693_v12 = vmul.f32 %v1620_v36, %v1597_v51 }
 0x648   : > { %1760 = vst [vmem:[%s3002_s9 + $0x10] sm:$0xff] %v1744_v13  ;;  %v1729_v9 = vmul.f32 %v3463_v28, %v1695_v52  ;;  %v1721_v52 = vld [vmem:[%s2984_s26 + $0x68] sm:$0xff] }
 0x649   : > { %1758 = vst [vmem:[%s3002_s9] sm:$0xff] %v1742_v56  ;;  %v1727_v7 = vmul.f32 %v3463_v28, %v1693_v12  ;;  %v1640_v46 = vpop.permute.xlu1 %1639  ;;  %v1611_v56 = vld [vmem:[#allocation5 + $0x78] sm:$0xff]  ;;  %v1720_v12 = vld [vmem:[%s2984_s26 + $0x60] sm:$0xff] }
 0x64a   : > { %v1745_v50 = vadd.f32 %v1729_v9, %v1711_v35  ;;  %v1697_v38 = vmul.f32 %v1640_v46, %v1601_v11  ;;  %v1635_v60 = vpop.permute.xlu0 %1634  ;;  %v1610_v11 = vld [vmem:[#allocation5 + $0x70] sm:$0xff] }
 0x64b   : > { %v1743_v20 = vadd.f32 %v1727_v7, %v1709_v30  ;;  %v1696_v57 = vmul.f32 %v1635_v60, %v1600_v19 }
 0x64c   : > { %1761 = vst [vmem:[%s3002_s9 + $0x18] sm:$0xff] %v1745_v50  ;;  %v1731_v2 = vmul.f32 %v3463_v28, %v1697_v38  ;;  %v1723_v38 = vld [vmem:[%s2984_s26 + $0x78] sm:$0xff] }
 0x64d   : > { %1759 = vst [vmem:[%s3002_s9 + $0x8] sm:$0xff] %v1743_v20  ;;  %v1730_v23 = vmul.f32 %v3463_v28, %v1696_v57  ;;  %v1650_v61 = vpop.permute.xlu1 %1649 }
 0x64e   : > { %v1747_v21 = vadd.f32 %v1731_v2, %v1713_v34  ;;  %v1699_v55 = vmul.f32 %v1650_v61, %v1603_v45  ;;  %v1645_v18 = vpop.permute.xlu0 %1644  ;;  %v1722_v34 = vld [vmem:[%s2984_s26 + $0x70] sm:$0xff] }
 0x64f   : > { %v1746_v33 = vadd.f32 %v1730_v23, %v1712_v24  ;;  %v1698_v1 = vmul.f32 %v1645_v18, %v1602_v42 }
 0x650   : > { %1763 = vst [vmem:[%s3002_s9 + $0x28] sm:$0xff] %v1747_v21  ;;  %v1733_v32 = vmul.f32 %v3463_v28, %v1699_v55 }
 0x651   : > { %1762 = vst [vmem:[%s3002_s9 + $0x20] sm:$0xff] %v1746_v33  ;;  %v1732_v14 = vmul.f32 %v3463_v28, %v1698_v1  ;;  %v1660_v49 = vpop.permute.xlu1 %1659 }
 0x652   : > { %v1749_v39 = vadd.f32 %v1733_v32, %v1715_v62  ;;  %v1701_v53 = vmul.f32 %v1660_v49, %v1605_v3  ;;  %v1655_v4 = vpop.permute.xlu0 %1654 }
 0x653   : > { %v1748_v5 = vadd.f32 %v1732_v14, %v1714_v10  ;;  %v1700_v31 = vmul.f32 %v1655_v4, %v1604_v22 }
 0x654   : > { %1765 = vst [vmem:[%s3002_s9 + $0x38] sm:$0xff] %v1749_v39  ;;  %v1735_v8 = vmul.f32 %v3463_v28, %v1701_v53 }
 0x655   : > { %1764 = vst [vmem:[%s3002_s9 + $0x30] sm:$0xff] %v1748_v5  ;;  %v1734_v43 = vmul.f32 %v3463_v28, %v1700_v31  ;;  %v1670_v27 = vpop.permute.xlu1 %1669 }
 0x656   : > { %v1751_v58 = vadd.f32 %v1735_v8, %v1717_v6  ;;  %v1703_v44 = vmul.f32 %v1670_v27, %v1607_v26  ;;  %v1665_v15 = vpop.permute.xlu0 %1664 }
 0x657   : > { %v1750_v47 = vadd.f32 %v1734_v43, %v1716_v59  ;;  %v1702_v48 = vmul.f32 %v1665_v15, %v1606_v63 }
 0x658   : > { %1767 = vst [vmem:[%s3002_s9 + $0x48] sm:$0xff] %v1751_v58  ;;  %v1737_v17 = vmul.f32 %v3463_v28, %v1703_v44 }
 0x659   : > { %1766 = vst [vmem:[%s3002_s9 + $0x40] sm:$0xff] %v1750_v47  ;;  %v1736_v29 = vmul.f32 %v3463_v28, %v1702_v48  ;;  %v1680_v37 = vpop.permute.xlu1 %1679 }
 0x65a   : > { %v1753_v51 = vadd.f32 %v1737_v17, %v1719_v41  ;;  %v1705_v0 = vmul.f32 %v1680_v37, %v1609_v16  ;;  %v1675_v54 = vpop.permute.xlu0 %1674 }
 0x65b   : > { %v1752_v13 = vadd.f32 %v1736_v29, %v1718_v25  ;;  %v1704_v36 = vmul.f32 %v1675_v54, %v1608_v40 }
 0x65c   : > { %1769 = vst [vmem:[%s3002_s9 + $0x58] sm:$0xff] %v1753_v51  ;;  %v1739_v35 = vmul.f32 %v3463_v28, %v1705_v0 }
 0x65d   : > { %1768 = vst [vmem:[%s3002_s9 + $0x50] sm:$0xff] %v1752_v13  ;;  %v1738_v9 = vmul.f32 %v3463_v28, %v1704_v36  ;;  %v1690_v30 = vpop.permute.xlu1 %1689 }
 0x65e   : > { %v1755_v19 = vadd.f32 %v1739_v35, %v1721_v52  ;;  %v1707_v7 = vmul.f32 %v1690_v30, %v1611_v56  ;;  %v1685_v46 = vpop.permute.xlu0 %1684 }
 0x65f   : > { %v1754_v50 = vadd.f32 %v1738_v9, %v1720_v12  ;;  %v1706_v60 = vmul.f32 %v1685_v46, %v1610_v11 }
 0x660   : > { %1771 = vst [vmem:[%s3002_s9 + $0x68] sm:$0xff] %v1755_v19  ;;  %v1741_v20 = vmul.f32 %v3463_v28, %v1707_v7 }
 0x661   : > { %1770 = vst [vmem:[%s3002_s9 + $0x60] sm:$0xff] %v1754_v50  ;;  %v1740_v57 = vmul.f32 %v3463_v28, %v1706_v60 }
 0x662   : > { %v1757_v45 = vadd.f32 %v1741_v20, %v1723_v38 }
 0x663   : > { %v1756_v2 = vadd.f32 %v1740_v57, %v1722_v34 }
 0x664   : > { %1773 = vst [vmem:[%s3002_s9 + $0x78] sm:$0xff] %v1757_v45 }
 0x665   : > { %1772 = vst [vmem:[%s3002_s9 + $0x70] sm:$0xff] %v1756_v2 }
 0x666 PF: > { %s3659_s16 = sld [smem:[#allocation20_spill]]  ;;  %s3660_s11 = sld [smem:[#allocation21_spill]] }
 0x667   : > { %s1790_s8 = sshll.u32 %s3002_s9, 4  ;;  %s3662_s15 = sld [smem:[#allocation31_spill]]  ;;  %s3516_s8 = int_to_ptr.vmem [resolvable:$true] %s1790_s8 }
 0x668   : > { %s1775_s14 = scalar_lea.sflag [#allocation9], %s2980_s4  ;;  %s2512_s2 = scalar_lea.vmem %s3516_s8, 2048 }
 0x669   : > { %p2513_p11 = scmp.ne.s32.totalorder %s3516_s8, %s2512_s2  ;;  %s2671_s23 = smov [#allocation13]  }
 0x66a   : > { %s2516_s9 = sshll.u32 %s2671_s23, 4  ;;  %s2517_s9 = int_to_ptr.vmem [resolvable:$false] %s2516_s9 }
 0x66b   : > { %p2514_p0 = pnand %p2513_p11, %p2845_p12  ;;  %s2518_s27 = scalar_lea.vmem %s2517_s9, 4096 }
 0x66c   : > { %s1967_s19 = sshll.u32 %s3659_s16, 4  ;;  %s1968_s17 = sshll.u32 %s3660_s11, 5 }
 0x66d   : > { %s1787_s5 = sadd.s32 %s1968_s17, %s1967_s19  ;;  %p2515_p9 = pneg %p2514_p0 }
 0x66e   : > { %s1969_s26 = sshll.u32 %s1787_s5, 7  ;;  %p2519_p6 = scmp.lt.s32.totalorder %s3516_s8, %s2517_s9 }
 0x66f   : > { %s3521_s13 = scalar_lea.hbm %s3662_s15, %s1969_s26  ;;  %p2520_p8 = scmp.lt.s32.totalorder %s2518_s27, %s2512_s2 }
 0x671   : > { %p2521_p10 = por %p2520_p8, %p2519_p6 }
 0x673   : > { %p2522_p2 = pnand %p2521_p10, %p2515_p9 }
 0x675   : > { %2525 = shalt.err (!%p2522_p2)
}
 0x676   : > { %s2526_s18 = scalar_lea.hbm %s3521_s13, 2048  ;;  %s2530_s19 = scalar_lea.hbm %s3662_s15, 8192 }
 0x677   : > { %p2527_p1 = scmp.ne.s32.totalorder %s3521_s13, %s2526_s18  ;;  %p2531_p13 = scmp.lt.u32.totalorder %s3521_s13, %s3662_s15 }
 0x678   : > { %p2532_p5 = scmp.lt.u32.totalorder %s2530_s19, %s2526_s18  ;;  %p2534_p11 = scmp.lt.u32.totalorder %s2526_s18, %s3521_s13 }
 0x679   : > { %p2528_p3 = pnand %p2527_p1, %p2845_p12 }
 0x67a   : > { %p2533_p7 = por %p2532_p5, %p2531_p13 }
 0x67b   : > { %p2529_p4 = pneg %p2528_p3 }
 0x67c   : > { %p2535_p0 = por %p2534_p11, %p2533_p7 }
 0x67e   : > { %p2536_p9 = pnand %p2535_p0, %p2529_p4 }
 0x680   : > { %2539 = shalt.err (!%p2536_p9)
}
 0x681   : > { %s2672_s26 = smov 128   ;;  %s2673_s7 = smov 8  }
 0x682   : > { %2156 = dma.vmem_to_hbm [thread:$0]  (%p2845_p12), %s3516_s8, 2048, %s3521_s13, %s1775_s14, %s2672_s26, %s2672_s26, %s2673_s7  }
 0x683 PF: > { %s3663_s10 = sld [smem:[#allocation18_spill]]  ;;  %s3664_s2 = sld [smem:[#allocation24_spill]] }
 0x684   : > { %p2176_p6 = scmp.ge.s32.totalorder %s2658_s6, 2 }
 0x689   : > { %s1805_s23 = sand.u32 1, %s3663_s10   ;;  %p3665_p8 = scmp.ne.s32.totalorder %s3664_s2, 0 }
 0x68a   : > { %s1806_s9 = scalar_lea.sflag [#allocation9], %s1805_s23 }
 0x68b   : > { %p2170_p10 = pnand %p2176_p6, %p3665_p8 }
 0x68d   : > { %2605 = dma.done.wait (!%p2170_p10), %s1806_s9, 2048  }
 0x68e   : > { %2607 = vsyncadd (!%p2170_p10), %s1806_s9, 4294965248  ;;  %s25_s6 = sadd.s32 1, %s2658_s6   ;;  %s3667_s4 = smov %s2925_s20 }
 0x68f   : > { %p3552_p2 = scmp.ge.s32.totalorder %s25_s6, 10   ;;  %s3668_s12 = sld [smem:[#allocation25_spill]] }
 0x690   : > { %s3669_s8 = sld [smem:[#allocation27_spill]]  ;;  %s3670_s13 = sld [smem:[#allocation28_spill]] }
 0x691   : > { %s3672_s20 = smov %s2614_s21  ;;  %s3673_s21 = smov %s2618_s22 }
 0x692   : > { %s3674_s22 = smov %s3667_s4  ;;  %s3675_s23 = smov %s2626_s24 }
 0x693   : > { %s3676_s24 = smov %s2630_s25  ;;  %s3677_s25 = smov %s2868_s3 }
 0x694   : > { %s3678_s26 = smov %s2646_s28  ;;  %s3679_s4 = smov %s2650_s29 }
 0x695   : > { %s3680_s27 = smov %s2654_s30  ;;  %s3681_s28 = smov %s3668_s12 }
 0x696   : > { %s3682_s29 = smov %s3669_s8  ;;  %s3683_s30 = smov %s3670_s13 }
 0x697   :  { %24 = sbr.rel (!%p3552_p2) target bundleno = 17 (0x11), region = 110 }
 0x69e   :  { %1811 = vsyncpa [#allocation8], 1 }
 0x69f   :  { %1813 = vsyncpa [#allocation8 + $0x1], 1 }
 0x6a0   :  { %1814 = vsyncpa [#allocation11], 1 }
 0x6a1   :  { %1816 = vsyncpa [#allocation11 + $0x1], 1 }
 0x6a2   :  { %1817 = vsyncpa [#allocation9], 1 }
 0x6a3   :  { %1819 = vsyncpa [#allocation9 + $0x1], 1 }

</bundles_post_ra>
